<compile_context>
chip_gen: v7x
topology: tpu7x:2x2x1
jax: 0.10.0
libtpu: 0.0.40
codegen_flags: <defaults>
</compile_context>

<pallas_src>
import math
import functools

import jax
import jax.numpy as jnp
from jax import lax
from jax.experimental import pallas as pl
from jax.experimental.pallas import tpu as pltpu


def _predictor_kernel(norm_factor, N, node_dim, state_dim, emb_dim,
                      num_mlp_layers, c_pad, w_offs,
                      int_ref, flt_ref, w_ref, b_ref, out_ref):
    """Decision-predictor forward for one batch tile."""
    f32, bf16 = jnp.float32, jnp.bfloat16
    E, L = emb_dim, num_mlp_layers
    o_nd, o_qc, o_qs, o_kvx = w_offs[0], w_offs[1], w_offs[2], w_offs[3]
    o_mlp = w_offs[4:4 + L]
    o_out = w_offs[4 + L]

    fin = flt_ref[...]                                   # [Bt, N+1, F] f32
    Bt = fin.shape[0]
    nf = fin[:, :N, :node_dim]                           # node features
    curr_sel = fin[:, :N, node_dim:node_dim + 1]         # one-hot(curr) [Bt, N, 1]
    next_sel = fin[:, :N, node_dim + 1:node_dim + 2]     # one-hot(next)
    state = fin[:, N, :state_dim]                        # [Bt, sd]

    # ---- fused node + depot projection: ONE [Bt*N, nd] @ [nd, 2E] dot ----------
    w_nd = w_ref[o_nd:o_nd + node_dim, :2 * E]
    proj = jnp.dot(nf.astype(bf16).reshape(Bt * N, node_dim), w_nd,
                   preferred_element_type=f32).reshape(Bt, N, 2 * E)
    node_all = proj[:, :, :E] + b_ref[0:1, :E]           # node proj for every row
    depot_emb = proj[:, 0, E:2 * E] + b_ref[1:2, :E]     # row 0 / first coord_dim feats
    pos = lax.broadcasted_iota(jnp.int32, (Bt, N, 1), 1)
    nnf = jnp.where(pos == 0, depot_emb[:, None, :], node_all)   # [Bt, N, E] f32
    # dropout is identity at inference

    # ---- gather curr / next embeddings via one-hot lanes (VPU + sublane reduce) --
    # TODO(synk): out-of-range curr/next ids yield an all-zero embedding (PyTorch
    # gather would raise); ids are trusted upstream.
    curr_emb = jnp.sum(curr_sel * nnf, axis=1)           # [Bt, E]
    next_emb = jnp.sum(next_sel * nnf, axis=1)           # [Bt, E]

    # ---- q + curr-part of k/v in ONE fused dot ----------------------------------
    # (state path pre-folded in the wrapper: state @ (w_state @ w_q[2E:]) + b_state @ w_q[2E:])
    iq = jnp.concatenate([curr_emb, next_emb], axis=-1).astype(bf16)   # [Bt, 2E]
    qc = jnp.dot(iq, w_ref[o_qc:o_qc + 2 * E, :3 * E],
                 preferred_element_type=f32)                           # [Bt, 3E]
    q = (qc[:, :E]
         + jnp.dot(state.astype(bf16), w_ref[o_qs:o_qs + state_dim, :E],
                   preferred_element_type=f32)
         + b_ref[2:3, :E])                                             # [Bt, E]
    kv_c = qc[:, E:3 * E]                                              # [Bt, 2E]

    # ---- node part of k and v: ONE [Bt*N, E] @ [E, 2E] dot ----------------------
    kv = (jnp.dot(nnf.astype(bf16).reshape(Bt * N, E),
                  w_ref[o_kvx:o_kvx + E, :2 * E],
                  preferred_element_type=f32).reshape(Bt, N, 2 * E)
          + kv_c[:, None, :])                                          # [Bt, N, 2E]
    k = kv[:, :, :E]
    v = kv[:, :, E:2 * E]

    # ---- masked single-query attention, lane-dense softmax [Bt, N] --------------
    s = norm_factor * jnp.sum(q[:, None, :] * k, axis=-1)              # [Bt, N]
    mask = int_ref[...]                                                # [Bt, N] int32
    # TODO(synk): fully-masked rows give a uniform attention distribution instead
    # of the PyTorch -inf/NaN behaviour (intentional NaN-safety, finite mask value).
    s = jnp.where(mask > 0, s, f32(-1e30))
    m = jnp.max(s, axis=-1, keepdims=True)                             # [Bt, 1]
    e = jnp.exp(s - m)                                                 # [Bt, N]
    denom = jnp.sum(e, axis=-1, keepdims=True)                         # [Bt, 1]
    attn = e * pl.reciprocal(denom, approx=True)                       # [Bt, N]
    h = jnp.sum(attn[:, :, None] * v, axis=1)                          # [Bt, E] f32

    # ---- MLP head (dropout identity at inference) --------------------------------
    for i in range(L):
        h = jnp.maximum(
            jnp.dot(h.astype(bf16), w_ref[o_mlp[i]:o_mlp[i] + E, :E],
                    preferred_element_type=f32) + b_ref[3 + i:4 + i, :E],
            0.0)

    logits = (jnp.dot(h.astype(bf16), w_ref[o_out:o_out + E, :c_pad],
                      preferred_element_type=f32)
              + b_ref[3 + L:4 + L, :c_pad])                            # [Bt, c_pad]

    # ---- log_softmax (pad lanes carry bias -1e30 -> exp() == 0) -------------------
    lm = jnp.max(logits, axis=-1, keepdims=True)
    lse = jnp.log(jnp.sum(jnp.exp(logits - lm), axis=-1, keepdims=True)) + lm
    out_ref[...] = logits - lse                                        # [Bt, c_pad] store


def decision_predictor_forward(curr_node_id, next_node_id, node_feat, mask, state,
                               params, *, emb_dim, num_mlp_layers):
    """Runs the Pallas kernel. Returns log-probs [B, num_classes]."""
    B, N, node_dim = node_feat.shape
    state_dim = state.shape[-1]          # assumed > 0 (matches the configured module)
    coord_dim = params["w_depot"].shape[0]
    C = params["b_out"].shape[-1]
    E, L = emb_dim, num_mlp_layers
    C_PAD = ((max(C, 1) + 127) // 128) * 128          # lane-dense padded class dim
    SLAB_W = max(128, 3 * E, C_PAD)
    norm_factor = 1.0 / math.sqrt(E)
    f32, bf16 = jnp.float32, jnp.bfloat16

    # One grid step on single-TensorCore chips (v5e/v6e); split the batch across
    # v7x's two TensorCores only when the per-core tile stays 8-sublane aligned.
    try:
        kind = jax.devices()[0].device_kind.lower()
    except Exception:
        kind = ""
    num_steps = 2 if ("v7" in kind and B % 16 == 0) else 1
    Bt = B // num_steps

    # ---- packed data inputs (2 DMAs) ---------------------------------------------
    F = max(node_dim + 2, state_dim)
    n_iota = jnp.arange(N, dtype=jnp.int32)
    curr_oh = (n_iota[None, :] == curr_node_id.astype(jnp.int32)[:, None]).astype(f32)
    next_oh = (n_iota[None, :] == next_node_id.astype(jnp.int32)[:, None]).astype(f32)
    flt_in = jnp.zeros((B, N + 1, F), f32)
    flt_in = flt_in.at[:, :N, :node_dim].set(node_feat.astype(f32))
    flt_in = flt_in.at[:, :N, node_dim].set(curr_oh)
    flt_in = flt_in.at[:, :N, node_dim + 1].set(next_oh)
    flt_in = flt_in.at[:, N, :state_dim].set(state.astype(f32))
    int_in = mask.astype(jnp.int32).reshape(B, N)

    # ---- fused weights packed into ONE bf16 slab -----------------------------------
    w_q, w_k, w_v = params["w_q"], params["w_k"], params["w_v"]
    # node + depot projection share one dot: [nd, 2E] = [w_node | w_depot (zero-padded)]
    w_nd = jnp.zeros((node_dim, 2 * E), f32)
    w_nd = w_nd.at[:, :E].set(params["w_node"])
    w_nd = w_nd.at[:coord_dim, E:].set(params["w_depot"])
    # [curr|next] -> (q, k_curr, v_curr) in one dot: [2E, 3E]
    w_qc = jnp.zeros((2 * E, 3 * E), f32)
    w_qc = w_qc.at[:, :E].set(w_q[:2 * E])
    w_qc = w_qc.at[:E, E:2 * E].set(w_k[:E])
    w_qc = w_qc.at[:E, 2 * E:].set(w_v[:E])
    # state contribution folded through init_linear_state into the q path (f32 compose)
    w_qs = params["w_state"] @ w_q[2 * E:]            # [sd, E]
    b_qf = params["b_state"] @ w_q[2 * E:]            # [1, E]
    # node part of k and v packed along lanes: [E, 2E]
    w_kvx = jnp.concatenate([w_k[E:], w_v[E:]], axis=1)
    # output layer padded to C_PAD lanes; pad bias -1e30 vanishes in log_softmax
    w_out = jnp.zeros((E, C_PAD), f32).at[:, :C].set(params["w_out"])
    b_out = jnp.full((1, C_PAD), -1e30, f32).at[:, :C].set(params["b_out"].reshape(1, C))

    mats = [w_nd, w_qc, w_qs, w_kvx] + [params[f"w_mlp{i}"] for i in range(L)] + [w_out]
    w_offs, r = [], 0
    for m_ in mats:
        w_offs.append(r)
        r += -(-m_.shape[0] // 8) * 8                 # 8-sublane aligned row blocks
    w_slab = jnp.zeros((r, SLAB_W), f32)
    for off, m_ in zip(w_offs, mats):
        w_slab = w_slab.at[off:off + m_.shape[0], :m_.shape[1]].set(m_)
    w_slab = w_slab.astype(bf16)

    # ---- biases packed into ONE f32 slab -------------------------------------------
    b_rows = -(-(4 + L) // 8) * 8
    b_slab = jnp.zeros((b_rows, SLAB_W), f32)
    b_slab = b_slab.at[0, :E].set(params["b_node"][0])
    b_slab = b_slab.at[1, :E].set(params["b_depot"][0])
    b_slab = b_slab.at[2, :E].set(b_qf[0])
    for i in range(L):
        b_slab = b_slab.at[3 + i, :E].set(params[f"b_mlp{i}"][0])
    b_slab = b_slab.at[3 + L, :C_PAD].set(b_out[0])

    kernel = functools.partial(
        _predictor_kernel, norm_factor, N, node_dim, state_dim, E, L, C_PAD,
        tuple(w_offs))

    out = pl.pallas_call(
        kernel,
        out_shape=jax.ShapeDtypeStruct((B, C_PAD), f32),
        grid_spec=pltpu.PrefetchScalarGridSpec(
            num_scalar_prefetch=0,
            grid=(num_steps,),
            in_specs=[
                pl.BlockSpec((Bt, N), lambda g: (g, 0)),
                pl.BlockSpec((Bt, N + 1, F), lambda g: (g, 0, 0)),
                pl.BlockSpec(w_slab.shape, lambda g: (0, 0)),
                pl.BlockSpec(b_slab.shape, lambda g: (0, 0)),
            ],
            out_specs=pl.BlockSpec((Bt, C_PAD), lambda g: (g, 0)),
        ),
        compiler_params=pltpu.CompilerParams(
            dimension_semantics=("parallel",)),
    )(int_in, flt_in, w_slab, b_slab)
    return out[:, :C]


def make_params(key, coord_dim, node_dim, state_dim, emb_dim, num_mlp_layers, num_classes):
    """Deterministic synthetic init, uniform(-stdv, stdv) like reset_parameters."""
    params = {}

    def uni(k, shape, fan):
        stdv = 1.0 / math.sqrt(fan)
        return jax.random.uniform(k, shape, jnp.float32, -stdv, stdv)

    keys = iter(jax.random.split(key, 64))
    params["w_node"] = uni(next(keys), (node_dim, emb_dim), node_dim)
    params["b_node"] = uni(next(keys), (1, emb_dim), emb_dim)
    params["w_depot"] = uni(next(keys), (coord_dim, emb_dim), coord_dim)
    params["b_depot"] = uni(next(keys), (1, emb_dim), emb_dim)
    params["w_state"] = uni(next(keys), (state_dim, emb_dim), state_dim)
    params["b_state"] = uni(next(keys), (1, emb_dim), emb_dim)
    n_q_in = (2 + int(state_dim > 0)) * emb_dim
    params["w_q"] = uni(next(keys), (n_q_in, emb_dim), emb_dim)
    params["w_k"] = uni(next(keys), (2 * emb_dim, emb_dim), emb_dim)
    params["w_v"] = uni(next(keys), (2 * emb_dim, emb_dim), emb_dim)
    for i in range(num_mlp_layers):
        params[f"w_mlp{i}"] = uni(next(keys), (emb_dim, emb_dim), emb_dim)
        params[f"b_mlp{i}"] = uni(next(keys), (1, emb_dim), emb_dim)
    params["w_out"] = uni(next(keys), (emb_dim, num_classes), emb_dim)
    params["b_out"] = uni(next(keys), (1, num_classes), num_classes)
    return params


def reference_forward(curr, nxt, node_feat, mask, state, params,
                      *, emb_dim, num_mlp_layers):
    """Pure-JAX f32 reference matching the PyTorch forward (eval mode)."""
    B = node_feat.shape[0]
    norm = 1.0 / math.sqrt(emb_dim)
    node_emb = node_feat[:, 1:, :] @ params["w_node"] + params["b_node"]
    depot_emb = node_feat[:, 0:1, :2] @ params["w_depot"] + params["b_depot"]
    nnf = jnp.concatenate([depot_emb, node_emb], axis=1)
    curr_emb = nnf[jnp.arange(B), curr][:, None, :]
    next_emb = nnf[jnp.arange(B), nxt][:, None, :]
    state_emb = state @ params["w_state"] + params["b_state"]
    input_q = jnp.concatenate([curr_emb, next_emb, state_emb[:, None, :]], axis=-1)
    input_kv = jnp.concatenate([jnp.broadcast_to(curr_emb, nnf.shape), nnf], axis=-1)
    q = input_q @ params["w_q"]
    k = input_kv @ params["w_k"]
    v = input_kv @ params["w_v"]
    compat = norm * jnp.einsum("bqe,bne->bqn", q, k)
    compat = jnp.where(mask[:, None, :] > 0, compat, -jnp.inf)
    attn = jax.nn.softmax(compat, axis=-1)
    h = jnp.einsum("bqn,bne->bqe", attn, v)[:, 0]
    for i in range(num_mlp_layers):
        h = jax.nn.relu(h @ params[f"w_mlp{i}"] + params[f"b_mlp{i}"])
    logits = h @ params["w_out"] + params["b_out"]
    return jax.nn.log_softmax(logits, axis=-1)


if __name__ == "__main__":
    # hyperparameters (small, consistent with the module's __init__)
    coord_dim, node_dim, state_dim = 2, 4, 2
    emb_dim, num_mlp_layers, num_classes = 32, 2, 4
    B, N = 8, 16

    key = jax.random.PRNGKey(0)
    k_par, k_nf, k_st, k_cur, k_nxt, k_msk = jax.random.split(key, 6)

    params = make_params(k_par, coord_dim, node_dim, state_dim,
                         emb_dim, num_mlp_layers, num_classes)

    node_feat = jax.random.normal(k_nf, (B, N, node_dim), jnp.float32)
    state = jax.random.normal(k_st, (B, state_dim), jnp.float32)
    curr_node_id = jax.random.randint(k_cur, (B,), 0, N, jnp.int32)
    next_node_id = jax.random.randint(k_nxt, (B,), 0, N, jnp.int32)
    mask = jax.random.bernoulli(k_msk, 0.7, (B, N)).astype(jnp.int32)
    mask = mask.at[:, 0].set(1)  # ensure at least one valid node per row

    out = decision_predictor_forward(
        curr_node_id, next_node_id, node_feat, mask, state, params,
        emb_dim=emb_dim, num_mlp_layers=num_mlp_layers)
    out = jax.block_until_ready(out)

    ref = reference_forward(
        curr_node_id, next_node_id, node_feat, mask, state, params,
        emb_dim=emb_dim, num_mlp_layers=num_mlp_layers)
    ref = jax.block_until_ready(ref)

    assert out.shape == (B, num_classes)
    # Tolerance reflects bf16 MXU operands (activations/weights) with f32 accumulation;
    # the f32 reference is the PyTorch-exact path.
    assert jnp.allclose(out, ref, rtol=5e-2, atol=5e-2), (out, ref)
    print("KERNEL_OK")
</pallas_src>

<mosaic_0001>
module attributes {stable_mosaic.version = 11 : i64} {
  func.func @_predictor_kernel(%arg0: i32, %arg1: memref<8x16xi32, #tpu.memory_space<vmem>>, %arg2: memref<8x17x6xf32, #tpu.memory_space<vmem>>, %arg3: memref<208x128xbf16, #tpu.memory_space<vmem>>, %arg4: memref<8x128xf32, #tpu.memory_space<vmem>>, %arg5: memref<8x128xf32, #tpu.memory_space<vmem>>) attributes {dimension_semantics = [#tpu.dimension_semantics<parallel>], iteration_bounds = array<i64: 1>, scalar_prefetch = 0 : i64, scratch_operands = 0 : i64, tpu.core_type = #tpu.core_type<tc>, window_params = [{transform_indices = @transform_0, window_bounds = array<i64: 8, 16>}, {transform_indices = @transform_1, window_bounds = array<i64: 8, 17, 6>}, {pipeline_mode = #tpu.pipeline_mode<synchronous>, transform_indices = @transform_2, window_bounds = array<i64: 208, 128>}, {pipeline_mode = #tpu.pipeline_mode<synchronous>, transform_indices = @transform_3, window_bounds = array<i64: 8, 128>}, {transform_indices = @transform_4, window_bounds = array<i64: 8, 128>}]} {
    %c0 = arith.constant 0 : index
    %c0_0 = arith.constant 0 : index
    %c0_1 = arith.constant 0 : index
    %0 = vector.load %arg2[%c0, %c0_0, %c0_1] : memref<8x17x6xf32, #tpu.memory_space<vmem>>, vector<8x17x6xf32>
    %1 = vector.extract_strided_slice %0 {offsets = [0, 0, 0], sizes = [8, 16, 4], strides = [1, 1, 1]} : vector<8x17x6xf32> to vector<8x16x4xf32>
    %2 = vector.extract_strided_slice %0 {offsets = [0, 0, 4], sizes = [8, 16, 1], strides = [1, 1, 1]} : vector<8x17x6xf32> to vector<8x16x1xf32>
    %3 = vector.extract_strided_slice %0 {offsets = [0, 0, 5], sizes = [8, 16, 1], strides = [1, 1, 1]} : vector<8x17x6xf32> to vector<8x16x1xf32>
    %4 = vector.extract_strided_slice %0 {offsets = [0, 16, 0], sizes = [8, 1, 2], strides = [1, 1, 1]} : vector<8x17x6xf32> to vector<8x1x2xf32>
    %5 = vector.shape_cast %4 : vector<8x1x2xf32> to vector<8x2xf32>
    %c0_2 = arith.constant 0 : index
    %c0_3 = arith.constant 0 : index
    %6 = vector.load %arg3[%c0_2, %c0_3] : memref<208x128xbf16, #tpu.memory_space<vmem>>, vector<4x64xbf16>
    %7 = arith.truncf %1 : vector<8x16x4xf32> to vector<8x16x4xbf16>
    %8 = vector.shape_cast %7 : vector<8x16x4xbf16> to vector<128x4xbf16>
    %cst = arith.constant dense<0.000000e+00> : vector<128x64xf32>
    %9 = tpu.matmul %8, %6, %cst {dimension_numbers = #tpu.dot_dimension_numbers<[1], [0], [0], [1], [0, 0, 1, 1], [], []>} : vector<128x4xbf16>, vector<4x64xbf16>, vector<128x64xf32> -> vector<128x64xf32>
    %10 = vector.shape_cast %9 : vector<128x64xf32> to vector<8x16x64xf32>
    %11 = vector.extract_strided_slice %10 {offsets = [0, 0, 0], sizes = [8, 16, 32], strides = [1, 1, 1]} : vector<8x16x64xf32> to vector<8x16x32xf32>
    %c0_4 = arith.constant 0 : index
    %c0_5 = arith.constant 0 : index
    %12 = vector.load %arg4[%c0_4, %c0_5] : memref<8x128xf32, #tpu.memory_space<vmem>>, vector<1x32xf32>
    %13 = vector.shape_cast %12 : vector<1x32xf32> to vector<1x1x32xf32>
    %14 = vector.broadcast %13 : vector<1x1x32xf32> to vector<8x16x32xf32>
    %15 = arith.addf %11, %14 : vector<8x16x32xf32>
    %16 = vector.extract_strided_slice %10 {offsets = [0, 0, 32], sizes = [8, 1, 32], strides = [1, 1, 1]} : vector<8x16x64xf32> to vector<8x1x32xf32>
    %17 = vector.shape_cast %16 : vector<8x1x32xf32> to vector<8x32xf32>
    %c1 = arith.constant 1 : index
    %c0_6 = arith.constant 0 : index
    %18 = vector.load %arg4[%c1, %c0_6] : memref<8x128xf32, #tpu.memory_space<vmem>>, vector<1x32xf32>
    %19 = vector.broadcast %18 : vector<1x32xf32> to vector<8x32xf32>
    %20 = arith.addf %17, %19 : vector<8x32xf32>
    %21 = tpu.iota {dimensions = array<i32: 1>} : vector<8x16x1xi32>
    %c0_i32 = arith.constant 0 : i32
    %22 = vector.broadcast %c0_i32 : i32 to vector<8x16x1xi32>
    %23 = arith.cmpi eq, %21, %22 : vector<8x16x1xi32>
    %24 = vector.shape_cast %20 : vector<8x32xf32> to vector<8x1x32xf32>
    %25 = vector.shape_cast %23 : vector<8x16x1xi1> to vector<8x16x1xi1>
    %26 = vector.broadcast %25 : vector<8x16x1xi1> to vector<8x16x32xi1>
    %27 = vector.shape_cast %24 : vector<8x1x32xf32> to vector<8x1x32xf32>
    %28 = vector.broadcast %27 : vector<8x1x32xf32> to vector<8x16x32xf32>
    %29 = arith.select %26, %28, %15 : vector<8x16x32xi1>, vector<8x16x32xf32>
    %30 = vector.broadcast %2 : vector<8x16x1xf32> to vector<8x16x32xf32>
    %31 = arith.mulf %30, %29 : vector<8x16x32xf32>
    %cst_7 = arith.constant dense<0.000000e+00> : vector<8x32xf32>
    %32 = vector.multi_reduction <add>, %31, %cst_7 [1] : vector<8x16x32xf32> to vector<8x32xf32>
    %33 = vector.broadcast %3 : vector<8x16x1xf32> to vector<8x16x32xf32>
    %34 = arith.mulf %33, %29 : vector<8x16x32xf32>
    %cst_8 = arith.constant dense<0.000000e+00> : vector<8x32xf32>
    %35 = vector.multi_reduction <add>, %34, %cst_8 [1] : vector<8x16x32xf32> to vector<8x32xf32>
    %36 = tpu.concatenate %32, %35 in 1 : vector<8x32xf32>, vector<8x32xf32> -> vector<8x64xf32>
    %37 = arith.truncf %36 : vector<8x64xf32> to vector<8x64xbf16>
    %c8 = arith.constant 8 : index
    %c0_9 = arith.constant 0 : index
    %38 = vector.load %arg3[%c8, %c0_9] : memref<208x128xbf16, #tpu.memory_space<vmem>>, vector<64x96xbf16>
    %cst_10 = arith.constant dense<0.000000e+00> : vector<8x96xf32>
    %39 = tpu.matmul %37, %38, %cst_10 {dimension_numbers = #tpu.dot_dimension_numbers<[1], [0], [0], [1], [0, 0, 1, 1], [], []>} : vector<8x64xbf16>, vector<64x96xbf16>, vector<8x96xf32> -> vector<8x96xf32>
    %40 = vector.extract_strided_slice %39 {offsets = [0, 0], sizes = [8, 32], strides = [1, 1]} : vector<8x96xf32> to vector<8x32xf32>
    %41 = arith.truncf %5 : vector<8x2xf32> to vector<8x2xbf16>
    %c72 = arith.constant 72 : index
    %c0_11 = arith.constant 0 : index
    %42 = vector.load %arg3[%c72, %c0_11] : memref<208x128xbf16, #tpu.memory_space<vmem>>, vector<2x32xbf16>
    %cst_12 = arith.constant dense<0.000000e+00> : vector<8x32xf32>
    %43 = tpu.matmul %41, %42, %cst_12 {dimension_numbers = #tpu.dot_dimension_numbers<[1], [0], [0], [1], [0, 0, 1, 1], [], []>} : vector<8x2xbf16>, vector<2x32xbf16>, vector<8x32xf32> -> vector<8x32xf32>
    %44 = arith.addf %40, %43 : vector<8x32xf32>
    %c2 = arith.constant 2 : index
    %c0_13 = arith.constant 0 : index
    %45 = vector.load %arg4[%c2, %c0_13] : memref<8x128xf32, #tpu.memory_space<vmem>>, vector<1x32xf32>
    %46 = vector.broadcast %45 : vector<1x32xf32> to vector<8x32xf32>
    %47 = arith.addf %44, %46 : vector<8x32xf32>
    %48 = vector.extract_strided_slice %39 {offsets = [0, 32], sizes = [8, 64], strides = [1, 1]} : vector<8x96xf32> to vector<8x64xf32>
    %49 = arith.truncf %29 : vector<8x16x32xf32> to vector<8x16x32xbf16>
    %50 = vector.shape_cast %49 : vector<8x16x32xbf16> to vector<128x32xbf16>
    %c80 = arith.constant 80 : index
    %c0_14 = arith.constant 0 : index
    %51 = vector.load %arg3[%c80, %c0_14] : memref<208x128xbf16, #tpu.memory_space<vmem>>, vector<32x64xbf16>
    %cst_15 = arith.constant dense<0.000000e+00> : vector<128x64xf32>
    %52 = tpu.matmul %50, %51, %cst_15 {dimension_numbers = #tpu.dot_dimension_numbers<[1], [0], [0], [1], [0, 0, 1, 1], [], []>} : vector<128x32xbf16>, vector<32x64xbf16>, vector<128x64xf32> -> vector<128x64xf32>
    %53 = vector.shape_cast %52 : vector<128x64xf32> to vector<8x16x64xf32>
    %54 = vector.shape_cast %48 : vector<8x64xf32> to vector<8x1x64xf32>
    %55 = vector.broadcast %54 : vector<8x1x64xf32> to vector<8x16x64xf32>
    %56 = arith.addf %53, %55 : vector<8x16x64xf32>
    %57 = vector.extract_strided_slice %56 {offsets = [0, 0, 0], sizes = [8, 16, 32], strides = [1, 1, 1]} : vector<8x16x64xf32> to vector<8x16x32xf32>
    %58 = vector.extract_strided_slice %56 {offsets = [0, 0, 32], sizes = [8, 16, 32], strides = [1, 1, 1]} : vector<8x16x64xf32> to vector<8x16x32xf32>
    %59 = vector.shape_cast %47 : vector<8x32xf32> to vector<8x1x32xf32>
    %60 = vector.broadcast %59 : vector<8x1x32xf32> to vector<8x16x32xf32>
    %61 = arith.mulf %60, %57 : vector<8x16x32xf32>
    %cst_16 = arith.constant dense<0.000000e+00> : vector<8x16xf32>
    %62 = vector.multi_reduction <add>, %61, %cst_16 [2] : vector<8x16x32xf32> to vector<8x16xf32>
    %cst_17 = arith.constant 0.176776692 : f32
    %63 = vector.broadcast %cst_17 : f32 to vector<8x16xf32>
    %64 = arith.mulf %63, %62 : vector<8x16xf32>
    %c0_18 = arith.constant 0 : index
    %c0_19 = arith.constant 0 : index
    %65 = vector.load %arg1[%c0_18, %c0_19] : memref<8x16xi32, #tpu.memory_space<vmem>>, vector<8x16xi32>
    %c0_i32_20 = arith.constant 0 : i32
    %66 = vector.broadcast %c0_i32_20 : i32 to vector<8x16xi32>
    %67 = arith.cmpi sgt, %65, %66 : vector<8x16xi32>
    %cst_21 = arith.constant -1.000000e+30 : f32
    %68 = vector.broadcast %cst_21 : f32 to vector<8x16xf32>
    %69 = arith.select %67, %64, %68 : vector<8x16xi1>, vector<8x16xf32>
    %cst_22 = arith.constant dense<0xFF800000> : vector<8xf32>
    %70 = vector.multi_reduction <maximumf>, %69, %cst_22 [1] : vector<8x16xf32> to vector<8xf32>
    %71 = vector.shape_cast %70 : vector<8xf32> to vector<8x1xf32>
    %72 = vector.broadcast %71 : vector<8x1xf32> to vector<8x16xf32>
    %73 = arith.subf %69, %72 : vector<8x16xf32>
    %74 = math.exp %73 : vector<8x16xf32>
    %cst_23 = arith.constant dense<0.000000e+00> : vector<8xf32>
    %75 = vector.multi_reduction <add>, %74, %cst_23 [1] : vector<8x16xf32> to vector<8xf32>
    %76 = vector.shape_cast %75 : vector<8xf32> to vector<8x1xf32>
    %77 = tpu.reciprocal %76 {approx = true} : vector<8x1xf32> -> vector<8x1xf32>
    %78 = vector.broadcast %77 : vector<8x1xf32> to vector<8x16xf32>
    %79 = arith.mulf %74, %78 : vector<8x16xf32>
    %80 = vector.shape_cast %79 : vector<8x16xf32> to vector<8x16x1xf32>
    %81 = vector.broadcast %80 : vector<8x16x1xf32> to vector<8x16x32xf32>
    %82 = arith.mulf %81, %58 : vector<8x16x32xf32>
    %cst_24 = arith.constant dense<0.000000e+00> : vector<8x32xf32>
    %83 = vector.multi_reduction <add>, %82, %cst_24 [1] : vector<8x16x32xf32> to vector<8x32xf32>
    %84 = arith.truncf %83 : vector<8x32xf32> to vector<8x32xbf16>
    %c112 = arith.constant 112 : index
    %c0_25 = arith.constant 0 : index
    %85 = vector.load %arg3[%c112, %c0_25] : memref<208x128xbf16, #tpu.memory_space<vmem>>, vector<32x32xbf16>
    %cst_26 = arith.constant dense<0.000000e+00> : vector<8x32xf32>
    %86 = tpu.matmul %84, %85, %cst_26 {dimension_numbers = #tpu.dot_dimension_numbers<[1], [0], [0], [1], [0, 0, 1, 1], [], []>} : vector<8x32xbf16>, vector<32x32xbf16>, vector<8x32xf32> -> vector<8x32xf32>
    %c3 = arith.constant 3 : index
    %c0_27 = arith.constant 0 : index
    %87 = vector.load %arg4[%c3, %c0_27] : memref<8x128xf32, #tpu.memory_space<vmem>>, vector<1x32xf32>
    %88 = vector.broadcast %87 : vector<1x32xf32> to vector<8x32xf32>
    %89 = arith.addf %86, %88 : vector<8x32xf32>
    %cst_28 = arith.constant 0.000000e+00 : f32
    %90 = vector.broadcast %cst_28 : f32 to vector<8x32xf32>
    %91 = arith.maximumf %89, %90 : vector<8x32xf32>
    %92 = arith.truncf %91 : vector<8x32xf32> to vector<8x32xbf16>
    %c144 = arith.constant 144 : index
    %c0_29 = arith.constant 0 : index
    %93 = vector.load %arg3[%c144, %c0_29] : memref<208x128xbf16, #tpu.memory_space<vmem>>, vector<32x32xbf16>
    %cst_30 = arith.constant dense<0.000000e+00> : vector<8x32xf32>
    %94 = tpu.matmul %92, %93, %cst_30 {dimension_numbers = #tpu.dot_dimension_numbers<[1], [0], [0], [1], [0, 0, 1, 1], [], []>} : vector<8x32xbf16>, vector<32x32xbf16>, vector<8x32xf32> -> vector<8x32xf32>
    %c4 = arith.constant 4 : index
    %c0_31 = arith.constant 0 : index
    %95 = vector.load %arg4[%c4, %c0_31] : memref<8x128xf32, #tpu.memory_space<vmem>>, vector<1x32xf32>
    %96 = vector.broadcast %95 : vector<1x32xf32> to vector<8x32xf32>
    %97 = arith.addf %94, %96 : vector<8x32xf32>
    %cst_32 = arith.constant 0.000000e+00 : f32
    %98 = vector.broadcast %cst_32 : f32 to vector<8x32xf32>
    %99 = arith.maximumf %97, %98 : vector<8x32xf32>
    %100 = arith.truncf %99 : vector<8x32xf32> to vector<8x32xbf16>
    %c176 = arith.constant 176 : index
    %c0_33 = arith.constant 0 : index
    %101 = vector.load %arg3[%c176, %c0_33] : memref<208x128xbf16, #tpu.memory_space<vmem>>, vector<32x128xbf16>
    %cst_34 = arith.constant dense<0.000000e+00> : vector<8x128xf32>
    %102 = tpu.matmul %100, %101, %cst_34 {dimension_numbers = #tpu.dot_dimension_numbers<[1], [0], [0], [1], [0, 0, 1, 1], [], []>} : vector<8x32xbf16>, vector<32x128xbf16>, vector<8x128xf32> -> vector<8x128xf32>
    %c5 = arith.constant 5 : index
    %c0_35 = arith.constant 0 : index
    %103 = vector.load %arg4[%c5, %c0_35] : memref<8x128xf32, #tpu.memory_space<vmem>>, vector<1x128xf32>
    %104 = vector.broadcast %103 : vector<1x128xf32> to vector<8x128xf32>
    %105 = arith.addf %102, %104 : vector<8x128xf32>
    %cst_36 = arith.constant dense<0xFF800000> : vector<8xf32>
    %106 = vector.multi_reduction <maximumf>, %105, %cst_36 [1] : vector<8x128xf32> to vector<8xf32>
    %107 = vector.shape_cast %106 : vector<8xf32> to vector<8x1xf32>
    %108 = vector.broadcast %107 : vector<8x1xf32> to vector<8x128xf32>
    %109 = arith.subf %105, %108 : vector<8x128xf32>
    %110 = math.exp %109 : vector<8x128xf32>
    %cst_37 = arith.constant dense<0.000000e+00> : vector<8xf32>
    %111 = vector.multi_reduction <add>, %110, %cst_37 [1] : vector<8x128xf32> to vector<8xf32>
    %112 = vector.shape_cast %111 : vector<8xf32> to vector<8x1xf32>
    %113 = math.log %112 : vector<8x1xf32>
    %114 = arith.addf %113, %107 : vector<8x1xf32>
    %115 = vector.broadcast %114 : vector<8x1xf32> to vector<8x128xf32>
    %116 = arith.subf %105, %115 : vector<8x128xf32>
    %c0_38 = arith.constant 0 : index
    %c0_39 = arith.constant 0 : index
    %117 = vector.load %arg5[%c0_38, %c0_39] : memref<8x128xf32, #tpu.memory_space<vmem>>, vector<8x128xf32>
    tpu.vector_store %arg5[%c0_38, %c0_39], %116 {strides = array<i32>} : memref<8x128xf32, #tpu.memory_space<vmem>>, vector<8x128xf32>,
    return
  }
  func.func @transform_0(%arg0: i32) -> (i32, i32) {
    %c0_i32 = arith.constant 0 : i32
    %c0_i32_0 = arith.constant 0 : i32
    return %arg0, %c0_i32 : i32, i32
  }
  func.func @transform_1(%arg0: i32) -> (i32, i32, i32) {
    %c0_i32 = arith.constant 0 : i32
    %c0_i32_0 = arith.constant 0 : i32
    %c0_i32_1 = arith.constant 0 : i32
    return %arg0, %c0_i32, %c0_i32_0 : i32, i32, i32
  }
  func.func @transform_2(%arg0: i32) -> (i32, i32) {
    %c0_i32 = arith.constant 0 : i32
    %c0_i32_0 = arith.constant 0 : i32
    %c0_i32_1 = arith.constant 0 : i32
    return %c0_i32, %c0_i32_0 : i32, i32
  }
  func.func @transform_3(%arg0: i32) -> (i32, i32) {
    %c0_i32 = arith.constant 0 : i32
    %c0_i32_0 = arith.constant 0 : i32
    %c0_i32_1 = arith.constant 0 : i32
    return %c0_i32, %c0_i32_0 : i32, i32
  }
  func.func @transform_4(%arg0: i32) -> (i32, i32) {
    %c0_i32 = arith.constant 0 : i32
    %c0_i32_0 = arith.constant 0 : i32
    return %arg0, %c0_i32 : i32, i32
  }
}

</mosaic_0001>

<bundles_post_ra>
// kernel: tpu_custom_call.1
= control target key start
LH: loop header
LB: loop body
LE: loop exit
PB: predicated region body
PF: predicated region fallthrough
CT: control target
= control target key end

     0   :  { %vm77_vm0 = vcmask 1041408   ;;  %vm52_vm1 = vcmask 31744   ;;  %v2092_v10 = vmov 4   ;;  %s2831_s0 = inlined_call_operand.vmem [shape: s32[8,16], index: 0, kind: input, shape index: {}]   ;;  %s2832_s1 = inlined_call_operand.vmem [shape: f32[8,17,6], index: 1, kind: input, shape index: {}]   ;;  %s2833_s2 = inlined_call_operand.vmem [shape: bf16[208,128], index: 2, kind: input, shape index: {}]   ;;  %s2834_s3 = inlined_call_operand.vmem [shape: f32[8,128], index: 3, kind: input, shape index: {}]   ;;  %s2835_s4 = inlined_call_operand.hbm [shape: f32[8,128], index: 4, kind: output, shape index: {}]  }
   0x1   :  { %v43_v0 = vld [vmem:[%s2833_s2] sm:$0x3]  ;;  %v2136_v2 = vld [vmem:[%s2832_s1 + $0x8] sm:$0xff]  ;;  %v2143_v5 = vld [vmem:[%s2832_s1 + $0x18] sm:$0xff]  ;;  %2044 = vset.pattern.permute.xlu0 %v2092_v10  ;;  %2045 = vset.pattern.permute.xlu1 %v2092_v10 }
   0x2   :  { %v2131_v1 = vld [vmem:[%s2832_s1] sm:$0xff]  ;;  %2035 = vmatprep.subr.msk.bf16.mxu0 %vm77_vm0, %v43_v0  ;;  %v79_v3 = vsel %vm77_vm0, %v43_v0, 0  ;;  %v2153_v7 = vld [vmem:[%s2832_s1 + $0x30] sm:$0xff]  ;;  %v2160_v9 = vld [vmem:[%s2832_s1 + $0x38] sm:$0xff]  ;;  %349 = vperm.xlu1 %2045, %v2143_v5  }
   0x3   :  { %v44_v4 = vpack.c.bf16 %v2136_v2, %v2131_v1  ;;  %v2148_v6 = vld [vmem:[%s2832_s1 + $0x20] sm:$0xff]  ;;  %1956 = vmatpush3.bf16.msra.mxu0 %v79_v3  ;;  %v46_v11 = vpack.c.bf16 %v2160_v9, %v2153_v7  ;;  %339 = vperm.xlu0 %2044, %v2131_v1   ;;  %v2169_v12 = vld [vmem:[%s2832_s1 + $0x48] sm:$0xff]  ;;  %v2175_v13 = vld [vmem:[%s2832_s1 + $0x50] sm:$0xff] }
   0x4   :  { %v45_v8 = vpack.c.bf16 %v2148_v6, %v2143_v5  ;;  %v2180_v14 = vld [vmem:[%s2832_s1 + $0x60] sm:$0xff]  ;;  %v2185_v15 = vld [vmem:[%s2832_s1 + $0x68] sm:$0xff]  ;;  %v47_v16 = vpack.c.bf16 %v2175_v13, %v2169_v12  ;;  %v2205_v19 = vld [vmem:[%s2832_s1 + $0x78] sm:$0xff] }
   0x5   :  { %1957 = vmatprep.mubr.msk.bf16.mxu0 %vm52_vm1, %v44_v4  ;;  %v48_v17 = vpack.c.bf16 %v2185_v15, %v2180_v14  ;;  %v1890_v18 = vld [vmem:[%s2834_s3 + $0x1] ss:$0 sm:$0xff] }
   0x6   :  { %1958 = vmatmul.mubr.msk.bf16.vlgmr.msra.gmra.mrb[0].mxu0 %vm52_vm1, %v45_v8  ;;  %354 = vperm.xlu1 %2045, %v2148_v6   ;;  %v2210_v20 = vld [vmem:[%s2832_s1 + $0x80] sm:$0xff] }
   0x7   :  { %1961 = vmatprep.mubr.msk.bf16.mxu0 %vm52_vm1, %v46_v11  ;;  %344 = vperm.xlu0 %2044, %v2136_v2  }
   0xa   :  { %364 = vperm.xlu1 %2045, %v2160_v9  }
   0xb   :  { %359 = vperm.xlu0 %2044, %v2153_v7  }
   0xe   :  { %1962 = vmatmul.mubr.msk.bf16.gmra.mrb[4].mxu0 %vm52_vm1, %v47_v16 }
   0xf   :  { %1965 = vmatprep.mubr.msk.bf16.mxu0 %vm52_vm1, %v48_v17 }
  0x10   :  { %9 = vsyncpa [#allocation3], 0  ;;  %v2215_v21 = vld [vmem:[%s2832_s1 + $0x90] sm:$0xff]  ;;  %v2220_v22 = vld [vmem:[%s2832_s1 + $0x98] sm:$0xff]  ;;  %s2093_s21 = smov 32   ;;  %v49_v23 = vpack.c.bf16 %v2210_v20, %v2205_v19  ;;  %369 = vperm.xlu1 %2045, %v2169_v12   ;;  %v2094_v28 = vmov 5   ;;  %v216_v11 = vlaneseq }
  0x11   :  { %205 = vrot.lane.b32.xlu0 %v1890_v18, %s2093_s21  ;;  %v50_v24 = vpack.c.bf16 %v2220_v22, %v2215_v21  ;;  %v2235_v25 = vld [vmem:[%s2832_s1 + $0xa8] sm:$0xff]  ;;  %v2240_v26 = vld [vmem:[%s2832_s1 + $0xb0] sm:$0xff]  ;;  %v1889_v29 = vld [vmem:[%s2834_s3] ss:$0 sm:$0xff]  ;;  %vm433_vm3 = vcmask 523520   ;;  %s2095_s28 = smov 96  }
  0x12   :  { %v51_v27 = vpack.c.bf16 %v2240_v26, %v2235_v25  ;;  %vm666_vm4 = vcmask 1041409   ;;  %vm668_vm5 = vcmask 1042434   ;;  %vm670_vm6 = vcmask 1043459  }
  0x13   :  { %vm672_vm7 = vcmask 1044484   ;;  %vm674_vm8 = vcmask 1045509   ;;  %vm2097_vm9 = vmmov 0   ;;  %vm676_vm10 = vcmask 1046534  }
  0x14   :  { %379 = vperm.xlu1 %2045, %v2180_v14   ;;  %vm678_vm11 = vcmask 1047559   ;;  %vm699_vm12 = vcmask 261120   ;;  %vm822_vm13 = vcmask 1040384   ;;  %vm734_vm14 = vcmask 523264  }
  0x15   :  { %374 = vperm.xlu0 %2044, %v2175_v13   ;;  %vm818_vm15 = vcmask 15360   ;;  %vm1363_vm0 = vcmask 130112  }
  0x16   :  { %1966 = vmatmul.mubr.msk.bf16.gmra.mrb[8].mxu0 %vm52_vm1, %v49_v23 }
  0x17   :  { %1969 = vmatprep.mubr.msk.bf16.mxu0 %vm52_vm1, %v50_v24 }
  0x18   :  { %389 = vperm.xlu1 %2045, %v2205_v19  }
  0x19   :  { %384 = vperm.xlu0 %2044, %v2185_v15  }
  0x1c   :  { %399 = vperm.xlu1 %2045, %v2215_v21  }
  0x1d   :  { %394 = vperm.xlu0 %2044, %v2210_v20  }
  0x1e   :  { %1970 = vmatmul.mubr.msk.bf16.gmra.mrb[12].mxu0 %vm52_vm1, %v51_v27 }
  0x20   :  { %409 = vperm.xlu1 %2045, %v2235_v25  }
  0x21   :  { %404 = vperm.xlu0 %2044, %v2220_v22  }
  0x24   :  { %2046 = vset.pattern.permute.xlu1 %v2094_v28 }
  0x25   :  { %414 = vperm.xlu0 %2044, %v2240_v26  }
  0x29   :  { %2047 = vset.pattern.permute.xlu0 %v2094_v28 }
  0x81   :  { %v350_v63 = vpop.permute.xlu1 %349 }
  0x82   :  { %v340_v62 = vpop.permute.xlu0 %339 }
  0x86   :  { %v345_v0 = vpop.permute.xlu0 %344 }
  0xd9   :  { %v2255_v30 = vpop.f32.mrb[0].mxu0 }
  0xda   :  { %v185_v31 = vadd.f32 %v2255_v30, %v1889_v29  ;;  %v2258_v32 = vpop.f32.mrb[1].mxu0 }
  0xdb   :  { %v183_v33 = vadd.f32 %v1889_v29, %v2258_v32  ;;  %v1960_v34 = vpop.f32.mrb[2].mxu0 }
  0xdc   :  { %277 = vrot.lane.b32.xlu0 %v185_v31, %s2093_s21  ;;  %v118_v35 = vpop.f32.mrb[3].mxu0  ;;  %v186_v36 = vadd.f32 %v1960_v34, %v1889_v29 }
  0xdd   :  { %273 = vrot.lane.b32.xlu1 %v183_v33, %s2093_s21  ;;  %v184_v37 = vadd.f32 %v1889_v29, %v118_v35 }
  0xe0   :  { %279 = vrot.lane.b32.xlu0 %v186_v36, %s2093_s21 }
  0xe1   :  { %275 = vrot.lane.b32.xlu1 %v184_v37, %s2093_s21  ;;  %v2265_v38 = vpop.f32.mrb[4].mxu0 }
  0xe2   :  { %v189_v39 = vadd.f32 %v2265_v38, %v1889_v29  ;;  %v2268_v40 = vpop.f32.mrb[5].mxu0 }
  0xe3   :  { %v1964_v41 = vpop.f32.mrb[6].mxu0  ;;  %v187_v44 = vadd.f32 %v1889_v29, %v2268_v40 }
  0xe4   :  { %v190_v42 = vadd.f32 %v1964_v41, %v1889_v29  ;;  %v134_v43 = vpop.f32.mrb[7].mxu0 }
  0xe5   :  { %285 = vrot.lane.b32.xlu1 %v189_v39, %s2093_s21  ;;  %v188_v45 = vadd.f32 %v1889_v29, %v134_v43 }
  0xe6   :  { %287 = vrot.lane.b32.xlu0 %v190_v42, %s2093_s21 }
  0xe9   :  { %281 = vrot.lane.b32.xlu1 %v187_v44, %s2093_s21  ;;  %v2274_v46 = vpop.f32.mrb[8].mxu0 }
  0xea   :  { %v193_v47 = vadd.f32 %v2274_v46, %v1889_v29  ;;  %283 = vrot.lane.b32.xlu0 %v188_v45, %s2093_s21  ;;  %v2278_v48 = vpop.f32.mrb[9].mxu0 }
  0xeb   :  { %v1968_v49 = vpop.f32.mrb[10].mxu0  ;;  %v191_v52 = vadd.f32 %v1889_v29, %v2278_v48 }
  0xec   :  { %v194_v50 = vadd.f32 %v1968_v49, %v1889_v29  ;;  %v150_v51 = vpop.f32.mrb[11].mxu0 }
  0xed   :  { %293 = vrot.lane.b32.xlu1 %v193_v47, %s2093_s21  ;;  %v192_v53 = vadd.f32 %v1889_v29, %v150_v51 }
  0xee   :  { %295 = vrot.lane.b32.xlu0 %v194_v50, %s2093_s21 }
  0xf1   :  { %289 = vrot.lane.b32.xlu1 %v191_v52, %s2093_s21  ;;  %v2284_v54 = vpop.f32.mrb[12].mxu0 }
  0xf2   :  { %291 = vrot.lane.b32.xlu0 %v192_v53, %s2093_s21  ;;  %v2287_v55 = vpop.f32.mrb[13].mxu0  ;;  %v197_v60 = vadd.f32 %v2284_v54, %v1889_v29 }
  0xf3   :  { %v195_v56 = vadd.f32 %v1889_v29, %v2287_v55  ;;  %v1972_v57 = vpop.f32.mrb[14].mxu0 }
  0xf4   :  { %v166_v58 = vpop.f32.mrb[15].mxu0  ;;  %v198_v61 = vadd.f32 %v1972_v57, %v1889_v29 }
  0xf5   :  { %v196_v59 = vadd.f32 %v1889_v29, %v166_v58  ;;  %297 = vrot.lane.b32.xlu1 %v195_v56, %s2093_s21 }
  0xf7   :  { %299 = vrot.lane.b32.xlu0 %v196_v59, %s2093_s21 }
  0xf9   :  { %301 = vrot.lane.b32.xlu1 %v197_v60, %s2093_s21 }
  0xfb   :  { %303 = vrot.lane.b32.xlu0 %v198_v61, %s2093_s21 }
  0xfd   :  { %507 = vperm.xlu1 %2046, %v2131_v1   ;;  %v355_v1 = vpop.permute.xlu1 %354 }
  0xff   :  { %511 = vperm.xlu0 %2047, %v2136_v2   ;;  %v2311_v2 = vpop.permute.xlu0 %359 }
 0x101   :  { %515 = vperm.xlu1 %2046, %v2143_v5   ;;  %v2313_v3 = vpop.permute.xlu1 %364 }
 0x103   :  { %523 = vperm.xlu0 %2047, %v2153_v7   ;;  %v2315_v4 = vpop.permute.xlu0 %205 }
 0x104   :  { %v208_v17 = vadd.f32 %v2315_v4, %v2258_v32  ;;  %v211_v27 = vadd.f32 %v2265_v38, %v2315_v4  ;;  %v210_v34 = vadd.f32 %v2315_v4, %v2268_v40  ;;  %v213_v52 = vadd.f32 %v2274_v46, %v2315_v4 }
 0x105   :  { %519 = vperm.xlu1 %2046, %v2148_v6   ;;  %v370_v6 = vpop.permute.xlu1 %369 }
 0x107   :  { %531 = vperm.xlu0 %2047, %v2169_v12   ;;  %v375_v5 = vpop.permute.xlu0 %374 }
 0x109   :  { %527 = vperm.xlu1 %2046, %v2160_v9   ;;  %v2319_v8 = vpop.permute.xlu1 %379 }
 0x10b   :  { %539 = vperm.xlu0 %2047, %v2180_v14   ;;  %v2317_v7 = vpop.permute.xlu0 %384 }
 0x10d   :  { %535 = vperm.xlu1 %2046, %v2175_v13   ;;  %v2323_v10 = vpop.permute.xlu1 %389  ;;  %v2328_v13 = vshrl.u32 %v216_v11, 7 }
 0x10f   :  { %547 = vperm.xlu0 %2047, %v2205_v19   ;;  %v2321_v9 = vpop.permute.xlu0 %394  ;;  %v2335_v16 = vsub.s32 0, %v2328_v13  ;;  %vm219_vm2 = vcmp.eq.s32.totalorder %v2328_v13, 0 }
 0x111   :  { %543 = vperm.xlu1 %2046, %v2185_v15   ;;  %v2330_v14 = vpop.permute.xlu1 %399  ;;  %v209_v15 = vadd.f32 %v2255_v30, %v2315_v4  ;;  %v240_v37 = vrot.slane %v211_v27, %v2335_v16  ;;  %v236_v51 = vrot.slane %v210_v34, %v2335_v16 }
 0x113   :  { %555 = vperm.xlu0 %2047, %v2215_v21   ;;  %v2325_v12 = vpop.permute.xlu0 %404  ;;  %v228_v21 = vrot.slane %v208_v17, %v2335_v16 }
 0x115   :  { %551 = vperm.xlu1 %2046, %v2210_v20   ;;  %v2341_v19 = vpop.permute.xlu1 %409  ;;  %v232_v20 = vrot.slane %v209_v15, %v2335_v16  ;;  %v212_v15 = vadd.f32 %v2315_v4, %v2278_v48 }
 0x117   :  { %563 = vperm.xlu0 %2047, %v2235_v25   ;;  %v2339_v18 = vpop.permute.xlu0 %414 }
 0x119   :  { %559 = vperm.xlu1 %2046, %v2220_v22  }
 0x11d   :  { %567 = vperm.xlu1 %2046, %v2240_v26  }
 0x14e   :  { %v278_v22 = vpop.permute.xlu0 %277 }
 0x14f   :  { %v2348_v23 = vsel %vm219_vm2, %v232_v20, %v278_v22  ;;  %v274_v24 = vpop.permute.xlu1 %273 }
 0x150   :  { %v2352_v25 = vsel %vm219_vm2, %v228_v21, %v274_v24  ;;  %v419_v26 = vmul.f32 %v350_v63, %v2348_v23 }
 0x151   :  { %v417_v28 = vmul.f32 %v340_v62, %v2352_v25 }
 0x152   :  { %v2358_v29 = vpop.permute.xlu0 %279  ;;  %v443_v35 = vsel %vm433_vm3, %v419_v26, 0.0 }
 0x153   :  { %v420_v30 = vmul.f32 %v355_v1, %v2358_v29  ;;  %v2361_v31 = vpop.permute.xlu1 %275  ;;  %v434_v38 = vsel %vm433_vm3, %v417_v28, 0.0 }
 0x154   :  { %v418_v32 = vmul.f32 %v345_v0, %v2361_v31  ;;  %v873_v33 = vpack.c.bf16 %v2361_v31, %v2352_v25 }
 0x155   :  { %v444_v36 = vsel %vm433_vm3, %v420_v30, 0.0 }
 0x156   :  { %v445_v39 = vadd.f32 %v444_v36, %v443_v35  ;;  %v435_v41 = vsel %vm433_vm3, %v418_v32, 0.0  ;;  %893 = vrot.lane.b32.xlu1 %v873_v33, %s2095_s28  ;;  %v2096_v32 = vmov 0.0   ;;  %v2049_v36 = vld [vmem:[%s2833_s2 + $0xc] sm:$0xff]  }
 0x157   :  { %v436_v42 = vadd.f32 %v435_v41, %v434_v38  ;;  %v286_v43 = vpop.permute.xlu1 %285  ;;  %1973 = vmatprep.subr.bf16.mxu1 %v2096_v32  ;;  %2011 = vmatprep.subr.bf16.mxu0 %v2096_v32  ;;  %v214_v38 = vadd.f32 %v2315_v4, %v2287_v55 }
 0x158   :  { %v446_v44 = vrot.slane %v445_v39, 4  ;;  %v2376_v40 = vsel %vm219_vm2, %v240_v37, %v286_v43  ;;  %v2378_v45 = vpop.permute.xlu0 %287  ;;  %v244_v37 = vrot.slane %v212_v15, %v2335_v16  ;;  %1981 = vmatprep.mubr.msk.bf16.mxu1 %vm2097_vm9, %v2096_v32  ;;  %2015 = vmatprep.mubr.msk.bf16.mxu0 %vm2097_vm9, %v2096_v32 }
 0x159   :  { %v437_v47 = vrot.slane %v436_v42, 4  ;;  %v423_v49 = vmul.f32 %v370_v6, %v2376_v40  ;;  %v424_v50 = vmul.f32 %v375_v5, %v2378_v45  ;;  %v248_v6 = vrot.slane %v213_v52, %v2335_v16 }
 0x15a   :  { %v447_v53 = vadd.f32 %v446_v44, %v445_v39 }
 0x15b   :  { %v438_v56 = vadd.f32 %v437_v47, %v436_v42  ;;  %v461_v57 = vsel %vm433_vm3, %v423_v49, 0.0  ;;  %v462_v58 = vsel %vm433_vm3, %v424_v50, 0.0  ;;  %v282_v59 = vpop.permute.xlu1 %281 }
 0x15c   :  { %v448_v60 = vrot.slane %v447_v53, 2  ;;  %v463_v61 = vadd.f32 %v462_v58, %v461_v57  ;;  %v2389_v62 = vsel %vm219_vm2, %v236_v51, %v282_v59  ;;  %v2391_v63 = vpop.permute.xlu0 %283  ;;  %v2050_v57 = vld [vmem:[%s2833_s2 + $0x14] sm:$0xff]   ;;  %v215_v58 = vadd.f32 %v2284_v54, %v2315_v4 }
 0x15d   :  { %v439_v0 = vrot.slane %v438_v56, 2  ;;  %v421_v1 = vmul.f32 %v2311_v2, %v2389_v62  ;;  %v422_v46 = vmul.f32 %v2313_v3, %v2391_v63  ;;  %v875_v5 = vpack.c.bf16 %v2391_v63, %v2389_v62  ;;  %v2048_v2 = vld [vmem:[%s2833_s2 + $0x4] sm:$0xff]  }
 0x15e   :  { %v449_v17 = vadd.f32 %v448_v60, %v447_v53  ;;  %v464_v20 = vrot.slane %v463_v61, 4  ;;  %1974 = vmatpush3.bf16.msra.mxu1 %v2048_v2 }
 0x15f   :  { %v440_v21 = vadd.f32 %v439_v0, %v438_v56  ;;  %v452_v22 = vsel %vm433_vm3, %v421_v1, 0.0  ;;  %v453_v24 = vsel %vm433_vm3, %v422_v46, 0.0  ;;  %v294_v26 = vpop.permute.xlu1 %293  ;;  %897 = vrot.lane.b32.xlu1 %v875_v5, %s2095_s28  ;;  %1975 = vmatprep.subr.bf16.mxu1 %v2096_v32 }
 0x160   :  { %v450_v3 = vrot.slane %v449_v17, 1  ;;  %v465_v27 = vadd.f32 %v464_v20, %v463_v61  ;;  %v454_v28 = vadd.f32 %v453_v24, %v452_v22  ;;  %v2410_v48 = vsel %vm219_vm2, %v248_v6, %v294_v26  ;;  %v2412_v30 = vpop.permute.xlu0 %295 }
 0x161   :  { %v441_v33 = vrot.slane %v440_v21, 1  ;;  %v427_v34 = vmul.f32 %v2323_v10, %v2410_v48  ;;  %v428_v35 = vmul.f32 %v2321_v9, %v2412_v30  ;;  %v256_v22 = vrot.slane %v215_v58, %v2335_v16 }
 0x162   :  { %v451_v39 = vadd.f32 %v450_v3, %v449_v17  ;;  %v455_v41 = vrot.slane %v454_v28, 4  ;;  %v466_v10 = vrot.slane %v465_v27, 2  ;;  %1976 = vmatpush3.bf16.msra.mxu1 %v2049_v36 }
 0x163   :  { %v442_v42 = vadd.f32 %v441_v33, %v440_v21  ;;  %v479_v43 = vsel %vm433_vm3, %v427_v34, 0.0  ;;  %v480_v9 = vsel %vm433_vm3, %v428_v35, 0.0  ;;  %v290_v44 = vpop.permute.xlu1 %289  ;;  %1977 = vmatprep.subr.bf16.mxu1 %v2096_v32 }
 0x164   :  { %v456_v47 = vadd.f32 %v455_v41, %v454_v28  ;;  %v481_v49 = vadd.f32 %v480_v9, %v479_v43  ;;  %v2431_v50 = vsel %vm219_vm2, %v244_v37, %v290_v44  ;;  %v2433_v51 = vpop.permute.xlu0 %291 }
 0x165   :  { %v425_v55 = vmul.f32 %v2319_v8, %v2431_v50  ;;  %v426_v52 = vmul.f32 %v2317_v7, %v2433_v51  ;;  %v877_v53 = vpack.c.bf16 %v2433_v51, %v2431_v50  ;;  %v667_v56 = vsel %vm666_vm4, %v451_v39, %v442_v42 }
 0x166   :  { %v457_v59 = vrot.slane %v456_v47, 2  ;;  %v482_v60 = vrot.slane %v481_v49, 4  ;;  %v252_v8 = vrot.slane %v214_v38, %v2335_v16  ;;  %v467_v7 = vadd.f32 %v466_v10, %v465_v27  ;;  %1978 = vmatpush3.bf16.msra.mxu1 %v2050_v57 }
 0x167   :  { %v470_v61 = vsel %vm433_vm3, %v425_v55, 0.0  ;;  %v471_v0 = vsel %vm433_vm3, %v426_v52, 0.0  ;;  %901 = vrot.lane.b32.xlu1 %v877_v53, %s2095_s28  ;;  %v298_v1 = vpop.permute.xlu1 %297  ;;  %1979 = vmatprep.subr.bf16.mxu1 %v2096_v32 }
 0x168   :  { %v458_v46 = vadd.f32 %v457_v59, %v456_v47  ;;  %v483_v5 = vadd.f32 %v482_v60, %v481_v49  ;;  %v472_v6 = vadd.f32 %v471_v0, %v470_v61  ;;  %v2454_v54 = vsel %vm219_vm2, %v252_v8, %v298_v1 }
 0x169   :  { %v2456_v4 = vpop.permute.xlu0 %299  ;;  %v429_v21 = vmul.f32 %v2330_v14, %v2454_v54  ;;  %v468_v24 = vrot.slane %v467_v7, 1 }
 0x16a   :  { %v459_v15 = vrot.slane %v458_v46, 1  ;;  %v484_v17 = vrot.slane %v483_v5, 2  ;;  %v473_v20 = vrot.slane %v472_v6, 4  ;;  %v430_v26 = vmul.f32 %v2325_v12, %v2456_v4 }
 0x16b   :  { %v879_v2 = vpack.c.bf16 %v2456_v4, %v2454_v54  ;;  %v302_v3 = vpop.permute.xlu1 %301  ;;  %v488_v33 = vsel %vm433_vm3, %v429_v21, 0.0  ;;  %v469_v39 = vadd.f32 %v468_v24, %v467_v7 }
 0x16c   :  { %v460_v27 = vadd.f32 %v459_v15, %v458_v46  ;;  %v474_v28 = vadd.f32 %v473_v20, %v472_v6  ;;  %v485_v34 = vadd.f32 %v484_v17, %v483_v5  ;;  %v489_v14 = vsel %vm433_vm3, %v430_v26, 0.0 }
 0x16d   :  { %v2470_v35 = vsel %vm219_vm2, %v256_v22, %v302_v3  ;;  %905 = vrot.lane.b32.xlu1 %v879_v2, %s2095_s28  ;;  %v2473_v36 = vpop.permute.xlu0 %303  ;;  %v490_v37 = vadd.f32 %v489_v14, %v488_v33  ;;  %v874_v33 = vpack.c.bf16 %v2358_v29, %v2348_v23  ;;  %vm1437_vm2 = vcmask 130048  }
 0x16e   :  { %v475_v12 = vrot.slane %v474_v28, 2  ;;  %v431_v38 = vmul.f32 %v2341_v19, %v2470_v35  ;;  %v432_v41 = vmul.f32 %v2339_v18, %v2473_v36  ;;  %v669_v42 = vsel %vm668_vm5, %v460_v27, %v667_v56  ;;  %v2051_v19 = vld [vmem:[%s2833_s2 + $0x1c] sm:$0xff]  }
 0x16f   :  { %v491_v43 = vrot.slane %v490_v37, 4  ;;  %v486_v44 = vrot.slane %v485_v34, 1  ;;  %v671_v49 = vsel %vm670_vm6, %v469_v39, %v669_v42  ;;  %1980 = vmatpush3.bf16.msra.mxu1 %v2051_v19 }
 0x170   :  { %v476_v10 = vadd.f32 %v475_v12, %v474_v28  ;;  %v497_v9 = vsel %vm433_vm3, %v431_v38, 0.0  ;;  %v498_v47 = vsel %vm433_vm3, %v432_v41, 0.0  ;;  %1985 = vmatprep.subr.bf16.mxu1 %v2096_v32  ;;  %v876_v38 = vpack.c.bf16 %v2378_v45, %v2376_v40 }
 0x171   :  { %v492_v52 = vadd.f32 %v491_v43, %v490_v37  ;;  %v499_v53 = vadd.f32 %v498_v47, %v497_v9  ;;  %v487_v58 = vadd.f32 %v486_v44, %v485_v34 }
 0x172   :  { %v477_v55 = vrot.slane %v476_v10, 1 }
 0x173   :  { %v493_v57 = vrot.slane %v492_v52, 2  ;;  %v500_v56 = vrot.slane %v499_v53, 4 }
 0x174   :  { %v478_v18 = vadd.f32 %v477_v55, %v476_v10 }
 0x175   :  { %v501_v59 = vadd.f32 %v500_v56, %v499_v53  ;;  %v494_v60 = vadd.f32 %v493_v57, %v492_v52 }
 0x176   :  { %v673_v8 = vsel %vm672_vm7, %v478_v18, %v671_v49 }
 0x177   :  { %v675_v7 = vsel %vm674_vm8, %v487_v58, %v673_v8  ;;  %v495_v61 = vrot.slane %v494_v60, 1  ;;  %v502_v0 = vrot.slane %v501_v59, 2 }
 0x179   :  { %v496_v1 = vadd.f32 %v495_v61, %v494_v60  ;;  %v503_v46 = vadd.f32 %v502_v0, %v501_v59 }
 0x17b   :  { %v504_v6 = vrot.slane %v503_v46, 1  ;;  %v677_v15 = vsel %vm676_vm10, %v496_v1, %v675_v7 }
 0x17c   :  { %v508_v5 = vpop.permute.xlu1 %507 }
 0x17d   :  { %v570_v17 = vmul.f32 %v508_v5, %v2352_v25  ;;  %v505_v21 = vadd.f32 %v504_v6, %v503_v46 }
 0x17e   :  { %v512_v20 = vpop.permute.xlu0 %511 }
 0x17f   :  { %v571_v22 = vmul.f32 %v512_v20, %v2361_v31  ;;  %v679_v26 = vsel %vm678_vm11, %v505_v21, %v677_v15  ;;  %v586_v2 = vsel %vm433_vm3, %v570_v17, 0.0 }
 0x180   :  { %v516_v24 = vpop.permute.xlu1 %515  ;;  %680 = vrot.lane.b32.xlu0 %v679_v26, %s2095_s28 }
 0x181   :  { %v587_v3 = vsel %vm433_vm3, %v571_v22, 0.0  ;;  %v572_v25 = vmul.f32 %v516_v24, %v2348_v23 }
 0x182   :  { %v588_v27 = vadd.f32 %v587_v3, %v586_v2  ;;  %v524_v28 = vpop.permute.xlu0 %523 }
 0x183   :  { %v595_v39 = vsel %vm433_vm3, %v572_v25, 0.0  ;;  %v574_v41 = vmul.f32 %v524_v28, %v2389_v62 }
 0x184   :  { %v589_v34 = vrot.slane %v588_v27, 4  ;;  %v520_v14 = vpop.permute.xlu1 %519  ;;  %895 = vrot.lane.b32.xlu0 %v874_v33, %s2095_s28 }
 0x185   :  { %v573_v31 = vmul.f32 %v520_v14, %v2358_v29  ;;  %v878_v29 = vpack.c.bf16 %v2412_v30, %v2410_v48  ;;  %v604_v55 = vsel %vm433_vm3, %v574_v41, 0.0 }
 0x186   :  { %v590_v12 = vadd.f32 %v589_v34, %v588_v27  ;;  %v532_v37 = vpop.permute.xlu0 %531 }
 0x187   :  { %v596_v42 = vsel %vm433_vm3, %v573_v31, 0.0  ;;  %v576_v52 = vmul.f32 %v532_v37, %v2376_v40 }
 0x188   :  { %v591_v10 = vrot.slane %v590_v12, 2  ;;  %v597_v43 = vadd.f32 %v596_v42, %v595_v39  ;;  %v528_v23 = vpop.permute.xlu1 %527  ;;  %899 = vrot.lane.b32.xlu0 %v876_v38, %s2095_s28 }
 0x189   :  { %v575_v9 = vmul.f32 %v528_v23, %v2391_v63  ;;  %v880_v63 = vpack.c.bf16 %v2473_v36, %v2470_v35  ;;  %v613_v8 = vsel %vm433_vm3, %v576_v52, 0.0 }
 0x18a   :  { %v598_v44 = vrot.slane %v597_v43, 4  ;;  %v540_v47 = vpop.permute.xlu0 %539  ;;  %v592_v49 = vadd.f32 %v591_v10, %v590_v12 }
 0x18b   :  { %v605_v62 = vsel %vm433_vm3, %v575_v9, 0.0  ;;  %v578_v40 = vmul.f32 %v540_v47, %v2431_v50 }
 0x18c   :  { %v599_v53 = vadd.f32 %v598_v44, %v597_v43  ;;  %v606_v19 = vadd.f32 %v605_v62, %v604_v55  ;;  %v536_v18 = vpop.permute.xlu1 %535  ;;  %903 = vrot.lane.b32.xlu0 %v878_v29, %s2095_s28  ;;  %v593_v60 = vrot.slane %v592_v49, 1 }
 0x18d   :  { %v577_v57 = vmul.f32 %v536_v18, %v2378_v45  ;;  %v622_v21 = vsel %vm433_vm3, %v578_v40, 0.0 }
 0x18e   :  { %v600_v56 = vrot.slane %v599_v53, 2  ;;  %v607_v58 = vrot.slane %v606_v19, 4  ;;  %v548_v59 = vpop.permute.xlu0 %547  ;;  %v594_v20 = vadd.f32 %v593_v60, %v592_v49 }
 0x18f   :  { %v614_v7 = vsel %vm433_vm3, %v577_v57, 0.0  ;;  %v580_v22 = vmul.f32 %v548_v59, %v2410_v48 }
 0x190   :  { %v601_v61 = vadd.f32 %v600_v56, %v599_v53  ;;  %v608_v0 = vadd.f32 %v607_v58, %v606_v19  ;;  %v615_v1 = vadd.f32 %v614_v7, %v613_v8  ;;  %v544_v46 = vpop.permute.xlu1 %543  ;;  %907 = vrot.lane.b32.xlu0 %v880_v63, %s2095_s28 }
 0x191   :  { %v579_v45 = vmul.f32 %v544_v46, %v2433_v51  ;;  %v631_v14 = vsel %vm433_vm3, %v580_v22, 0.0 }
 0x192   :  { %v602_v5 = vrot.slane %v601_v61, 1  ;;  %v609_v6 = vrot.slane %v608_v0, 2  ;;  %v616_v15 = vrot.slane %v615_v1, 4  ;;  %v556_v17 = vpop.permute.xlu0 %555 }
 0x193   :  { %v623_v50 = vsel %vm433_vm3, %v579_v45, 0.0  ;;  %v582_v31 = vmul.f32 %v556_v17, %v2454_v54 }
 0x194   :  { %v603_v24 = vadd.f32 %v602_v5, %v601_v61  ;;  %v610_v26 = vadd.f32 %v609_v6, %v608_v0  ;;  %v617_v2 = vadd.f32 %v616_v15, %v615_v1  ;;  %v624_v3 = vadd.f32 %v623_v50, %v622_v21  ;;  %v552_v27 = vpop.permute.xlu1 %551  ;;  %v24_v50 = vld [vmem:[%s2832_s1 + $0x28] sm:$0x1] }
 0x195   :  { %v581_v51 = vmul.f32 %v552_v27, %v2412_v30  ;;  %v640_v29 = vsel %vm433_vm3, %v582_v31, 0.0 }
 0x196   :  { %v691_v28 = vsel %vm666_vm4, %v603_v24, %v594_v20  ;;  %v611_v33 = vrot.slane %v610_v26, 1  ;;  %v618_v25 = vrot.slane %v617_v2, 2  ;;  %v625_v34 = vrot.slane %v624_v3, 4  ;;  %v564_v41 = vpop.permute.xlu0 %563  ;;  %v27_v24 = vld [vmem:[%s2832_s1 + $0x40] sm:$0x1] }
 0x197   :  { %v632_v48 = vsel %vm433_vm3, %v581_v51, 0.0  ;;  %v584_v44 = vmul.f32 %v564_v41, %v2470_v35  ;;  %v780_v27 = vpack.c.bf16 %v27_v24, %v27_v24 }
 0x198   :  { %v612_v12 = vadd.f32 %v611_v33, %v610_v26  ;;  %v619_v37 = vadd.f32 %v618_v25, %v617_v2  ;;  %v626_v38 = vadd.f32 %v625_v34, %v624_v3  ;;  %v633_v39 = vadd.f32 %v632_v48, %v631_v14  ;;  %v560_v42 = vpop.permute.xlu1 %559  ;;  %v21_v2 = vld [vmem:[%s2832_s1 + $0x10] sm:$0x1]  ;;  %v30_v3 = vld [vmem:[%s2832_s1 + $0x58] sm:$0x1]  ;;  %v36_v48 = vld [vmem:[%s2832_s1 + $0x88] sm:$0x1] }
 0x199   :  { %v583_v10 = vmul.f32 %v560_v42, %v2456_v4  ;;  %v649_v63 = vsel %vm433_vm3, %v584_v44, 0.0  ;;  %v779_v26 = vpack.c.bf16 %v24_v50, %v24_v50  ;;  %v778_v51 = vpack.c.bf16 %v21_v2, %v21_v2  ;;  %v33_v33 = vld [vmem:[%s2832_s1 + $0x70] sm:$0x1] }
 0x19a   :  { %v692_v30 = vsel %vm668_vm5, %v612_v12, %v691_v28  ;;  %v620_v43 = vrot.slane %v619_v37, 1  ;;  %v627_v23 = vrot.slane %v626_v38, 2  ;;  %v634_v9 = vrot.slane %v633_v39, 4 }
 0x19b   :  { %v641_v54 = vsel %vm433_vm3, %v583_v10, 0.0  ;;  %v796_v28 = vunpack.c.l.b16 %v779_v26  ;;  %v781_v25 = vpack.c.bf16 %v30_v3, %v30_v3  ;;  %v797_v34 = vunpack.c.l.b16 %v780_v27 }
 0x19c   :  { %v621_v47 = vadd.f32 %v620_v43, %v619_v37  ;;  %v628_v49 = vadd.f32 %v627_v23, %v626_v38  ;;  %v635_v55 = vadd.f32 %v634_v9, %v633_v39  ;;  %v642_v52 = vadd.f32 %v641_v54, %v640_v29  ;;  %v568_v62 = vpop.permute.xlu1 %567  ;;  %v39_v39 = vld [vmem:[%s2832_s1 + $0xa0] sm:$0x1]  ;;  %v42_v43 = vld [vmem:[%s2832_s1 + $0xb8] sm:$0x1] }
 0x19d   :  { %v585_v53 = vmul.f32 %v568_v62, %v2473_v36  ;;  %v795_v14 = vunpack.c.l.b16 %v778_v51  ;;  %v803_v31 = vrot.slane %v796_v28, 7  ;;  %v782_v12 = vpack.c.bf16 %v33_v33, %v33_v33 }
 0x19e   :  { %v629_v19 = vrot.slane %v628_v49, 1  ;;  %v636_v4 = vrot.slane %v635_v55, 2  ;;  %v643_v18 = vrot.slane %v642_v52, 4  ;;  %v693_v57 = vsel %vm670_vm6, %v621_v47, %v692_v30 }
 0x19f   :  { %v650_v56 = vsel %vm433_vm3, %v585_v53, 0.0  ;;  %v798_v37 = vunpack.c.l.b16 %v781_v25  ;;  %v805_v38 = vrot.slane %v797_v34, 6  ;;  %v783_v41 = vpack.c.bf16 %v36_v48, %v36_v48 }
 0x1a0   :  { %v630_v58 = vadd.f32 %v629_v19, %v628_v49  ;;  %v637_v35 = vadd.f32 %v636_v4, %v635_v55  ;;  %v644_v59 = vadd.f32 %v643_v18, %v642_v52  ;;  %v651_v60 = vadd.f32 %v650_v56, %v649_v63  ;;  %v786_v19 = vld [vmem:[%s2833_s2 + $0x24] sm:$0x1] }
 0x1a1   :  { %v804_v42 = vsel %vm666_vm4, %v803_v31, %v795_v14  ;;  %v799_v10 = vunpack.c.l.b16 %v782_v12  ;;  %v807_v30 = vrot.slane %v798_v37, 5  ;;  %v784_v23 = vpack.c.bf16 %v39_v39, %v39_v39  ;;  %v1897_v12 = vld [vmem:[%s2834_s3 + $0x2] ss:$0 sm:$0xff] }
 0x1a2   :  { %v638_v8 = vrot.slane %v637_v35, 1  ;;  %v645_v40 = vrot.slane %v644_v59, 2  ;;  %v652_v7 = vrot.slane %v651_v60, 4  ;;  %v694_v61 = vsel %vm672_vm7, %v630_v58, %v693_v57 }
 0x1a3   :  { %v806_v9 = vsel %vm668_vm5, %v805_v38, %v804_v42  ;;  %v800_v29 = vunpack.c.l.b16 %v783_v41  ;;  %v809_v44 = vrot.slane %v799_v10, 4  ;;  %v785_v54 = vpack.c.bf16 %v42_v43, %v42_v43 }
 0x1a4   :  { %v639_v0 = vadd.f32 %v638_v8, %v637_v35  ;;  %v646_v36 = vadd.f32 %v645_v40, %v644_v59  ;;  %v653_v1 = vadd.f32 %v652_v7, %v651_v60  ;;  %v808_v47 = vsel %vm670_vm6, %v807_v30, %v806_v9  ;;  %v2052_v59 = vld [vmem:[%s2833_s2 + $0x28] sm:$0xff]   ;;  %v2053_v40 = vld [vmem:[%s2833_s2 + $0x30] sm:$0xff]  }
 0x1a5   :  { %v801_v49 = vunpack.c.l.b16 %v784_v23  ;;  %v811_v55 = vrot.slane %v800_v29, 3  ;;  %v810_v52 = vsel %vm672_vm7, %v809_v44, %v808_v47  ;;  %v802_v62 = vunpack.c.l.b16 %v785_v54 }
 0x1a6   :  { %v647_v46 = vrot.slane %v646_v36, 1  ;;  %v654_v45 = vrot.slane %v653_v1, 2  ;;  %v695_v5 = vsel %vm674_vm8, %v639_v0, %v694_v61  ;;  %v824_v58 = vsel %vm822_vm13, %v786_v19, 0 }
 0x1a7   :  { %v813_v53 = vrot.slane %v801_v49, 2  ;;  %v812_v4 = vsel %vm674_vm8, %v811_v55, %v810_v52  ;;  %v815_v63 = vrot.slane %v802_v62, 1 }
 0x1a8   :  { %v648_v6 = vadd.f32 %v647_v46, %v646_v36  ;;  %v655_v15 = vadd.f32 %v654_v45, %v653_v1 }
 0x1a9   :  { %v814_v35 = vsel %vm676_vm10, %v813_v53, %v812_v4 }
 0x1aa   :  { %v656_v17 = vrot.slane %v655_v15, 1  ;;  %v696_v20 = vsel %vm676_vm10, %v648_v6, %v695_v5  ;;  %v816_v60 = vsel %vm678_vm11, %v815_v63, %v814_v35  ;;  %v2098_v6 = vmov 1966171168  }
 0x1ab   :  { %v817_v8 = vpack.c.b16 %v816_v60, %v816_v60 }
 0x1ac   :  { %v657_v21 = vadd.f32 %v656_v17, %v655_v15  ;;  %v1045_v15 = vunpack.c.l.s4 %v2098_v6 }
 0x1ae   :  { %v697_v22 = vsel %vm678_vm11, %v657_v21, %v696_v20  ;;  %v1046_v17 = vunpack.c.0.s8 %v1045_v15 }
 0x1b0   :  { %v1049_v20 = vsub.s32 %v1046_v17, %v2328_v13 }
 0x1c8   :  { %v894_v7 = vpop.permute.xlu1 %893 }
 0x1d1   :  { %v898_v0 = vpop.permute.xlu1 %897 }
 0x1d9   :  { %v902_v1 = vpop.permute.xlu1 %901 }
 0x1df   :  { %v906_v45 = vpop.permute.xlu1 %905 }
 0x1f2   :  { %v681_v18 = vpop.permute.xlu0 %680 }
 0x1f3   :  { %v700_v57 = vsel %vm699_vm12, %v681_v18, %v697_v22 }
 0x1f4   :  { %v701_v56 = vpack.c.bf16 %v700_v57, %v700_v57 }
 0x1f6   :  { %1982 = vmatmul.mubr.msk.bf16.vlgmr.msra.gmra.mrb[0].mxu1 %vm734_vm14, %v701_v56  ;;  %v896_v61 = vpop.permute.xlu0 %895 }
 0x1f7   :  { %1986 = vmatpush3.bf16.msra.mxu1 %v824_v58  ;;  %1987 = vmatprep.mubr.msk.bf16.mxu1 %vm2097_vm9, %v2096_v32 }
 0x1f8   :  { %1991 = vmatprep.subr.bf16.mxu1 %v2052_v59 }
 0x1fa   :  { %v900_v36 = vpop.permute.xlu0 %899 }
 0x1fe   :  { %1988 = vmatmul.mubr.msk.bf16.vlgmr.msra.gmra.mrb[4].mxu1 %vm818_vm15, %v817_v8  ;;  %v904_v46 = vpop.permute.xlu0 %903 }
 0x1ff   :  { %1992 = vmatpush3.bf16.msra.mxu1 %v2052_v59  ;;  %1995 = vmatprep.mubr.msk.bf16.mxu1 %vm699_vm12, %v894_v7 }
 0x200   :  { %1993 = vmatprep.subr.bf16.mxu1 %v2053_v40 }
 0x202   :  { %v908_v5 = vpop.permute.xlu0 %907 }
 0x203   :  { %1994 = vmatpush3.bf16.msra.mxu1 %v2053_v40 }
 0x206   :  { %1996 = vmatmul.mubr.msk.bf16.vlgmr.msra.gmra.mrb[8].mxu1 %vm699_vm12, %v896_v61 }
 0x207   :  { %1999 = vmatprep.mubr.msk.bf16.mxu1 %vm699_vm12, %v898_v0 }
 0x20e   :  { %2000 = vmatmul.mubr.msk.bf16.gmra.mrb[12].mxu1 %vm699_vm12, %v900_v36 }
 0x20f   :  { %2003 = vmatprep.mubr.msk.bf16.mxu1 %vm699_vm12, %v902_v1 }
 0x216   :  { %2004 = vmatmul.mubr.msk.bf16.gmra.mrb[16].mxu1 %vm699_vm12, %v904_v46 }
 0x217   :  { %2007 = vmatprep.mubr.msk.bf16.mxu1 %vm699_vm12, %v906_v45 }
 0x21e   :  { %2008 = vmatmul.mubr.msk.bf16.gmra.mrb[20].mxu1 %vm699_vm12, %v908_v5 }
 0x2c9   :  { %v772_v21 = vpop.f32.mrb[0].mxu1 }
 0x2ca   :  { %v1043_v22 = vcombine.high %v772_v21, %v772_v21  ;;  %v1050_v50 = vrot.slane %v772_v21, %v1049_v20  ;;  %v1983_v24 = vpop.f32.mrb[1].mxu1 }
 0x2cb   :  { %v775_v26 = vpop.f32.mrb[2].mxu1 }
 0x2cc   :  { %v1057_v2 = vrot.slane %v1043_v22, %v1049_v20  ;;  %v1058_v3 = vcombine.high %v1050_v50, %v1050_v50  ;;  %v1066_v27 = vrot.slane %v1050_v50, %v1049_v20  ;;  %v1984_v51 = vpop.f32.mrb[3].mxu1 }
 0x2ce   :  { %v1095_v28 = vrot.slane %v1066_v27, %v2335_v16  ;;  %v1080_v33 = vrot.slane %v1058_v3, %v1049_v20  ;;  %v1088_v25 = vcombine.high %v1066_v27, %v1066_v27  ;;  %v1059_v34 = vcombine.high %v1057_v2, %v1057_v2 }
 0x2cf   :  { %v1073_v41 = vrot.slane %v1057_v2, %v1049_v20 }
 0x2d0   :  { %1124 = vrot.lane.b32.xlu1 %v1095_v28, %s2095_s28  ;;  %v1099_v14 = vrot.slane %v1080_v33, %v2335_v16  ;;  %v1090_v31 = vcombine.high %v1080_v33, %v1080_v33  ;;  %v1103_v38 = vrot.slane %v1088_v25, %v2335_v16  ;;  %v1087_v10 = vrot.slane %v1059_v34, %v1049_v20 }
 0x2d1   :  { %v860_v48 = vpop.f32.mrb[4].mxu1  ;;  %v1111_v44 = vrot.slane %v1073_v41, %v2335_v16  ;;  %v1089_v54 = vcombine.high %v1073_v41, %v1073_v41 }
 0x2d2   :  { %v866_v37 = vadd.f32 %v860_v48, %v772_v21  ;;  %1126 = vrot.lane.b32.xlu0 %v1099_v14, %s2095_s28  ;;  %v1989_v39 = vpop.f32.mrb[5].mxu1  ;;  %v1107_v43 = vrot.slane %v1090_v31, %v2335_v16  ;;  %v1115_v47 = vrot.slane %v1087_v10, %v2335_v16  ;;  %v1091_v52 = vcombine.high %v1087_v10, %v1087_v10 }
 0x2d3   :  { %v863_v42 = vpop.f32.mrb[6].mxu1  ;;  %v1119_v4 = vrot.slane %v1089_v54, %v2335_v16 }
 0x2d4   :  { %v872_v30 = vadd.f32 %v1897_v12, %v866_v37  ;;  %1128 = vrot.lane.b32.xlu1 %v1103_v38, %s2095_s28  ;;  %v1990_v23 = vpop.f32.mrb[7].mxu1  ;;  %v1123_v35 = vrot.slane %v1091_v52, %v2335_v16 }
 0x2d6   :  { %v1165_v9 = vcombine.high %v872_v30, %v872_v30  ;;  %v1172_v29 = vrot.slane %v872_v30, %v1049_v20  ;;  %1130 = vrot.lane.b32.xlu0 %v1107_v43, %s2095_s28 }
 0x2d8   :  { %v1179_v49 = vrot.slane %v1165_v9, %v1049_v20  ;;  %v1180_v55 = vcombine.high %v1172_v29, %v1172_v29  ;;  %1132 = vrot.lane.b32.xlu1 %v1111_v44, %s2095_s28  ;;  %v1188_v62 = vrot.slane %v1172_v29, %v1049_v20 }
 0x2d9   :  { %v1997_v53 = vpop.f32.mrb[8].mxu1 }
 0x2da   :  { %1134 = vrot.lane.b32.xlu0 %v1115_v47, %s2095_s28  ;;  %v979_v19 = vpop.f32.mrb[9].mxu1  ;;  %v2615_v18 = vrot.slane %v1180_v55, %v1049_v20  ;;  %v2617_v57 = vrot.slane %v1179_v49, %v1049_v20  ;;  %v1181_v56 = vcombine.high %v1179_v49, %v1179_v49  ;;  %v1217_v21 = vrot.slane %v1188_v62, %v2335_v16 }
 0x2db   :  { %v1998_v63 = vpop.f32.mrb[10].mxu1  ;;  %v1210_v50 = vcombine.high %v1188_v62, %v1188_v62 }
 0x2dc   :  { %1136 = vrot.lane.b32.xlu1 %v1119_v4, %s2095_s28  ;;  %v982_v58 = vpop.f32.mrb[11].mxu1  ;;  %v2621_v59 = vrot.slane %v1181_v56, %v1049_v20  ;;  %v1221_v51 = vrot.slane %v2615_v18, %v2335_v16  ;;  %v1212_v43 = vcombine.high %v2615_v18, %v2615_v18  ;;  %v1233_v23 = vrot.slane %v2617_v57, %v2335_v16 }
 0x2dd   :  { %v1225_v48 = vrot.slane %v1210_v50, %v2335_v16 }
 0x2de   :  { %1138 = vrot.lane.b32.xlu0 %v1123_v35, %s2095_s28  ;;  %v1229_v52 = vrot.slane %v1212_v43, %v2335_v16  ;;  %v1211_v35 = vcombine.high %v2617_v57, %v2617_v57  ;;  %v1213_v57 = vcombine.high %v2621_v59, %v2621_v59 }
 0x2e1   :  { %v2001_v60 = vpop.f32.mrb[12].mxu1 }
 0x2e2   :  { %v995_v8 = vpop.f32.mrb[13].mxu1 }
 0x2e3   :  { %v2002_v40 = vpop.f32.mrb[14].mxu1 }
 0x2e4   :  { %v998_v7 = vpop.f32.mrb[15].mxu1 }
 0x2e9   :  { %v2005_v61 = vpop.f32.mrb[16].mxu1 }
 0x2ea   :  { %v1011_v0 = vpop.f32.mrb[17].mxu1 }
 0x2eb   :  { %v2006_v36 = vpop.f32.mrb[18].mxu1 }
 0x2ec   :  { %v1014_v1 = vpop.f32.mrb[19].mxu1 }
 0x2f1   :  { %v2624_v46 = vpop.f32.mrb[20].mxu1 }
 0x2f2   :  { %v1027_v45 = vpop.f32.mrb[21].mxu1 }
 0x2f3   :  { %v2626_v5 = vpop.f32.mrb[22].mxu1 }
 0x2f4   :  { %v1030_v6 = vpop.f32.mrb[23].mxu1 }
 0x342   :  { %v1125_v15 = vpop.permute.xlu1 %1124 }
 0x343   :  { %v2628_v17 = vadd.f32 %v1125_v15, %v979_v19  ;;  %v2630_v20 = vadd.f32 %v1125_v15, %v982_v58  ;;  %v1237_v58 = vrot.slane %v2621_v59, %v2335_v16 }
 0x344   :  { %v1127_v22 = vpop.permute.xlu0 %1126 }
 0x345   :  { %v2633_v24 = vadd.f32 %v1997_v53, %v1127_v22  ;;  %v2635_v26 = vadd.f32 %v1998_v63, %v1127_v22  ;;  %v1254_v2 = vmul.f32 %v1217_v21, %v2628_v17  ;;  %v1255_v3 = vmul.f32 %v1217_v21, %v2630_v20 }
 0x346   :  { %v1129_v27 = vpop.permute.xlu1 %1128 }
 0x347   :  { %v2641_v28 = vadd.f32 %v1129_v27, %v995_v8  ;;  %v2643_v33 = vadd.f32 %v1129_v27, %v998_v7  ;;  %v1270_v25 = vsel %vm699_vm12, %v1254_v2, 0.0  ;;  %v1273_v34 = vsel %vm699_vm12, %v1255_v3, 0.0 }
 0x348   :  { %1271 = vadd.xlane.f32.xlu1 %v1270_v25  ;;  %1274 = vadd.xlane.f32.xlu0 %v1273_v34  ;;  %v1257_v14 = vmul.f32 %v1221_v51, %v2635_v26  ;;  %v1256_v31 = vmul.f32 %v1221_v51, %v2633_v24  ;;  %v1131_v12 = vpop.permute.xlu0 %1130  ;;  %v1245_v2 = vrot.slane %v1213_v57, %v2335_v16 }
 0x349   :  { %v1259_v38 = vmul.f32 %v1225_v48, %v2643_v33  ;;  %v1258_v39 = vmul.f32 %v1225_v48, %v2641_v28  ;;  %v2662_v9 = vadd.f32 %v2001_v60, %v1131_v12  ;;  %v2664_v29 = vadd.f32 %v2002_v40, %v1131_v12 }
 0x34a   :  { %v1133_v37 = vpop.permute.xlu1 %1132  ;;  %v1279_v10 = vsel %vm699_vm12, %v1257_v14, 0.0  ;;  %v1276_v30 = vsel %vm699_vm12, %v1256_v31, 0.0  ;;  %v1353_v48 = vand.u32 127, %v216_v11 }
 0x34b   :  { %v2652_v41 = vadd.f32 %v1133_v37, %v1011_v0  ;;  %v2654_v42 = vadd.f32 %v1133_v37, %v1014_v1  ;;  %v1285_v44 = vsel %vm699_vm12, %v1259_v38, 0.0  ;;  %v1282_v54 = vsel %vm699_vm12, %v1258_v39, 0.0 }
 0x34c   :  { %1280 = vadd.xlane.f32.xlu1 %v1279_v10  ;;  %1277 = vadd.xlane.f32.xlu0 %v1276_v30  ;;  %v1135_v55 = vpop.permute.xlu0 %1134  ;;  %v1261_v62 = vmul.f32 %v1229_v52, %v2664_v29  ;;  %v1260_v53 = vmul.f32 %v1229_v52, %v2662_v9  ;;  %v1241_v1 = vrot.slane %v1211_v35, %v2335_v16  ;;  %v1358_v38 = vadd.s32 4294967288, %v1353_v48 }
 0x34d   :  { %v1263_v47 = vmul.f32 %v1233_v23, %v2654_v42  ;;  %v1262_v49 = vmul.f32 %v1233_v23, %v2652_v41  ;;  %v2673_v19 = vadd.f32 %v2005_v61, %v1135_v55  ;;  %v2675_v4 = vadd.f32 %v2006_v36, %v1135_v55 }
 0x34e   :  { %v1137_v56 = vpop.permute.xlu1 %1136  ;;  %v1291_v60 = vsel %vm699_vm12, %v1261_v62, 0.0  ;;  %v1288_v8 = vsel %vm699_vm12, %v1260_v53, 0.0  ;;  %v1356_v30 = vsub.s32 %v1353_v48, %v2328_v13  ;;  %v1361_v23 = vsub.s32 %v1358_v38, %v2328_v13 }
 0x34f   :  { %v1297_v18 = vsel %vm699_vm12, %v1263_v47, 0.0  ;;  %v1294_v63 = vsel %vm699_vm12, %v1262_v49, 0.0  ;;  %v2685_v40 = vadd.f32 %v1137_v56, %v1027_v45  ;;  %v2687_v7 = vadd.f32 %v1137_v56, %v1030_v6 }
 0x350   :  { %1286 = vadd.xlane.f32.xlu1 %v1285_v44  ;;  %1283 = vadd.xlane.f32.xlu0 %v1282_v54  ;;  %v1139_v61 = vpop.permute.xlu0 %1138  ;;  %v1265_v0 = vmul.f32 %v1237_v58, %v2675_v4  ;;  %v1264_v36 = vmul.f32 %v1237_v58, %v2673_v19 }
 0x351   :  { %v2695_v15 = vadd.f32 %v2624_v46, %v1139_v61  ;;  %v2698_v45 = vadd.f32 %v2626_v5, %v1139_v61  ;;  %v1267_v22 = vmul.f32 %v1241_v1, %v2687_v7  ;;  %v1266_v50 = vmul.f32 %v1241_v1, %v2685_v40 }
 0x352   :  { %v1303_v6 = vsel %vm699_vm12, %v1265_v0, 0.0  ;;  %v1300_v21 = vsel %vm699_vm12, %v1264_v36, 0.0 }
 0x353   :  { %v1309_v59 = vsel %vm699_vm12, %v1267_v22, 0.0  ;;  %v1306_v46 = vsel %vm699_vm12, %v1266_v50, 0.0  ;;  %v1269_v3 = vmul.f32 %v1245_v2, %v2698_v45  ;;  %v1268_v5 = vmul.f32 %v1245_v2, %v2695_v15 }
 0x354   :  { %1298 = vadd.xlane.f32.xlu1 %v1297_v18  ;;  %1295 = vadd.xlane.f32.xlu0 %v1294_v63 }
 0x355   :  { %v1315_v27 = vsel %vm699_vm12, %v1269_v3, 0.0  ;;  %v1312_v51 = vsel %vm699_vm12, %v1268_v5, 0.0 }
 0x358   :  { %1292 = vadd.xlane.f32.xlu1 %v1291_v60  ;;  %1289 = vadd.xlane.f32.xlu0 %v1288_v8 }
 0x35c   :  { %1304 = vadd.xlane.f32.xlu1 %v1303_v6  ;;  %1301 = vadd.xlane.f32.xlu0 %v1300_v21 }
 0x360   :  { %1310 = vadd.xlane.f32.xlu1 %v1309_v59  ;;  %1307 = vadd.xlane.f32.xlu0 %v1306_v46 }
 0x364   :  { %1316 = vadd.xlane.f32.xlu1 %v1315_v27  ;;  %1313 = vadd.xlane.f32.xlu0 %v1312_v51 }
 0x3d5   :  { %v1272_v25 = vpop.xlane.xlu1 %1271  ;;  %v1275_v34 = vpop.xlane.xlu0 %1274 }
 0x3d6   :  { %v1318_v43 = vmul.f32 0.17677669, %v1272_v25  ;;  %v1319_v44 = vmul.f32 0.17677669, %v1275_v34 }
 0x3d8   :  { %v1357_v11 = vrot.slane %v1318_v43, %v1356_v30  ;;  %v1362_v63 = vrot.slane %v1319_v44, %v1361_v23 }
 0x3d9   :  { %v1281_v14 = vpop.xlane.xlu1 %1280  ;;  %v1278_v31 = vpop.xlane.xlu0 %1277 }
 0x3da   :  { %v1321_v54 = vmul.f32 0.17677669, %v1281_v14  ;;  %v1320_v47 = vmul.f32 0.17677669, %v1278_v31  ;;  %v1364_v50 = vsel %vm1363_vm0, %v1362_v63, %v1357_v11 }
 0x3dc   :  { %v1372_v56 = vrot.slane %v1321_v54, %v1361_v23  ;;  %v1368_v58 = vrot.slane %v1320_v47, %v1356_v30  ;;  %v1334_v47 = vld [vmem:[%s2831_s0] sm:$0xff] }
 0x3dd   :  { %v1287_v12 = vpop.xlane.xlu1 %1286  ;;  %v1284_v37 = vpop.xlane.xlu0 %1283  ;;  %vm1335_vm1 = vcmp.gt.s32.totalorder %v1334_v47, 0 }
 0x3de   :  { %v1323_v49 = vmul.f32 0.17677669, %v1287_v12  ;;  %v1322_v55 = vmul.f32 0.17677669, %v1284_v37  ;;  %v1373_v22 = vsel %vm1363_vm0, %v1372_v56, %v1368_v58 }
 0x3df   :  { %v1428_v34 = vsel %vm666_vm4, %v1373_v22, %v1364_v50  ;;  %v1473_v22 = vsub.s32 2, %v2328_v13 }
 0x3e0   :  { %v1381_v35 = vrot.slane %v1323_v49, %v1361_v23  ;;  %v1377_v60 = vrot.slane %v1322_v55, %v1356_v30 }
 0x3e1   :  { %v1299_v39 = vpop.xlane.xlu1 %1298  ;;  %v1296_v10 = vpop.xlane.xlu0 %1295 }
 0x3e2   :  { %v1327_v6 = vmul.f32 0.17677669, %v1299_v39  ;;  %v1326_v21 = vmul.f32 0.17677669, %v1296_v10  ;;  %v1382_v2 = vsel %vm1363_vm0, %v1381_v35, %v1377_v60 }
 0x3e3   :  { %v1429_v48 = vsel %vm668_vm5, %v1382_v2, %v1428_v34  ;;  %v1484_v2 = vsub.s32 3, %v2328_v13 }
 0x3e4   :  { %v1399_v14 = vrot.slane %v1327_v6, %v1361_v23  ;;  %v1395_v31 = vrot.slane %v1326_v21, %v1356_v30  ;;  %v1462_v6 = vsub.s32 1, %v2328_v13 }
 0x3e5   :  { %v1293_v52 = vpop.xlane.xlu1 %1292  ;;  %v1290_v62 = vpop.xlane.xlu0 %1289 }
 0x3e6   :  { %v1325_v53 = vmul.f32 0.17677669, %v1293_v52  ;;  %v1324_v18 = vmul.f32 0.17677669, %v1290_v62  ;;  %v1400_v49 = vsel %vm1363_vm0, %v1399_v14, %v1395_v31  ;;  %v2054_v14 = vld [vmem:[%s2833_s2 + $0x38] sm:$0xff]   ;;  %v2055_v31 = vld [vmem:[%s2833_s2 + $0x40] sm:$0xff]  }
 0x3e7   :  { %2012 = vmatpush3.bf16.msra.mxu0 %v2054_v14 }
 0x3e8   :  { %v1390_v8 = vrot.slane %v1325_v53, %v1361_v23  ;;  %v1386_v61 = vrot.slane %v1324_v18, %v1356_v30  ;;  %2013 = vmatprep.subr.bf16.mxu0 %v2096_v32 }
 0x3e9   :  { %v1305_v0 = vpop.xlane.xlu1 %1304  ;;  %v1302_v36 = vpop.xlane.xlu0 %1301 }
 0x3ea   :  { %v1329_v1 = vmul.f32 0.17677669, %v1305_v0  ;;  %v1328_v57 = vmul.f32 0.17677669, %v1302_v36  ;;  %v1391_v59 = vsel %vm1363_vm0, %v1390_v8, %v1386_v61 }
 0x3eb   :  { %v1430_v38 = vsel %vm670_vm6, %v1391_v59, %v1429_v48  ;;  %2014 = vmatpush3.bf16.msra.mxu0 %v2055_v31 }
 0x3ec   :  { %v1408_v5 = vrot.slane %v1329_v1, %v1361_v23  ;;  %v1404_v27 = vrot.slane %v1328_v57, %v1356_v30  ;;  %v1431_v53 = vsel %vm672_vm7, %v1400_v49, %v1430_v38  ;;  %2019 = vmatprep.subr.bf16.mxu0 %v2096_v32 }
 0x3ed   :  { %v1311_v46 = vpop.xlane.xlu1 %1310  ;;  %v1308_v3 = vpop.xlane.xlu0 %1307 }
 0x3ee   :  { %v1331_v51 = vmul.f32 0.17677669, %v1311_v46  ;;  %v1330_v25 = vmul.f32 0.17677669, %v1308_v3  ;;  %v1409_v43 = vsel %vm1363_vm0, %v1408_v5, %v1404_v27  ;;  %v1495_v46 = vsub.s32 4, %v2328_v13 }
 0x3ef   :  { %v1432_v18 = vsel %vm674_vm8, %v1409_v43, %v1431_v53  ;;  %v1506_v3 = vsub.s32 5, %v2328_v13  ;;  %v1517_v27 = vsub.s32 6, %v2328_v13 }
 0x3f0   :  { %v1417_v12 = vrot.slane %v1331_v51, %v1361_v23  ;;  %v1413_v37 = vrot.slane %v1330_v25, %v1356_v30  ;;  %v1528_v25 = vsub.s32 7, %v2328_v13 }
 0x3f1   :  { %v1317_v39 = vpop.xlane.xlu1 %1316  ;;  %v1314_v10 = vpop.xlane.xlu0 %1313 }
 0x3f2   :  { %v1333_v44 = vmul.f32 0.17677669, %v1317_v39  ;;  %v1332_v54 = vmul.f32 0.17677669, %v1314_v10  ;;  %v1418_v55 = vsel %vm1363_vm0, %v1417_v12, %v1413_v37 }
 0x3f3   :  { %v1433_v63 = vsel %vm676_vm10, %v1418_v55, %v1432_v18 }
 0x3f4   :  { %v1426_v52 = vrot.slane %v1333_v44, %v1361_v23  ;;  %v1422_v62 = vrot.slane %v1332_v54, %v1356_v30 }
 0x3f6   :  { %v1427_v11 = vsel %vm1363_vm0, %v1426_v52, %v1422_v62 }
 0x3f7   :  { %v1434_v56 = vsel %vm678_vm11, %v1427_v11, %v1433_v63 }
 0x3f8   :  { %v1436_v58 = vsel %vm1335_vm1, %v1434_v56, -1e+30 }
 0x3f9   :  { %v1438_v35 = vsel %vm1437_vm2, %v1436_v58, -inf }
 0x3fa   :  { %1439 = vmax.xlane.f32.xlu0 %v1438_v35 }
 0x487   :  { %v1440_v60 = vpop.xlane.xlu0 %1439 }
 0x488   :  { %v1441_v8 = vsub.f32 %v1436_v58, %v1440_v60 }
 0x48a   :  { %v1442_v61 = vmul.f32 1.442695, %v1441_v8 }
 0x48c   :  { %2060 = vpow2.f32 %v1442_v61 }
 0x496   :  { %v2061_v30 = vpop.eup %2060 }
 0x497   :  { %v1444_v23 = vsel %vm1437_vm2, %v2061_v30, 0.0 }
 0x498   :  { %1445 = vadd.xlane.f32.xlu1 %v1444_v23 }
 0x525   :  { %v1446_v0 = vpop.xlane.xlu1 %1445 }
 0x526   :  { %2062 = vrcp.f32 %v1446_v0 }
 0x530   :  { %v2063_v36 = vpop.eup %2062 }
 0x531   :  { %v1448_v1 = vmul.f32 %v2063_v36, %v2061_v30 }
 0x533   :  { %v1452_v57 = vrot.slane %v1448_v1, %v2335_v16  ;;  %v1463_v21 = vrot.slane %v1448_v1, %v1462_v6  ;;  %v1474_v50 = vrot.slane %v1448_v1, %v1473_v22  ;;  %v1485_v59 = vrot.slane %v1448_v1, %v1484_v2 }
 0x534   :  { %v1496_v16 = vrot.slane %v1448_v1, %v1495_v46  ;;  %v1507_v5 = vrot.slane %v1448_v1, %v1506_v3  ;;  %v1518_v51 = vrot.slane %v1448_v1, %v1517_v27  ;;  %v1529_v34 = vrot.slane %v1448_v1, %v1528_v25 }
 0x535   :  { %1458 = vbcast.lane.b32.xlu1 %v1452_v57, 264  ;;  %1454 = vbcast.lane.b32.xlu0 %v1452_v57, 256 }
 0x539   :  { %1465 = vbcast.lane.b32.xlu1 %v1463_v21, 256  ;;  %1469 = vbcast.lane.b32.xlu0 %v1463_v21, 264 }
 0x53d   :  { %1476 = vbcast.lane.b32.xlu1 %v1474_v50, 256  ;;  %1480 = vbcast.lane.b32.xlu0 %v1474_v50, 264 }
 0x541   :  { %1487 = vbcast.lane.b32.xlu1 %v1485_v59, 256  ;;  %1491 = vbcast.lane.b32.xlu0 %v1485_v59, 264 }
 0x545   :  { %1498 = vbcast.lane.b32.xlu1 %v1496_v16, 256  ;;  %1502 = vbcast.lane.b32.xlu0 %v1496_v16, 264 }
 0x549   :  { %1509 = vbcast.lane.b32.xlu1 %v1507_v5, 256  ;;  %1513 = vbcast.lane.b32.xlu0 %v1507_v5, 264 }
 0x54d   :  { %1520 = vbcast.lane.b32.xlu1 %v1518_v51, 256  ;;  %1524 = vbcast.lane.b32.xlu0 %v1518_v51, 264 }
 0x551   :  { %1531 = vbcast.lane.b32.xlu1 %v1529_v34, 256  ;;  %1535 = vbcast.lane.b32.xlu0 %v1529_v34, 264 }
 0x5a7   :  { %v1459_v13 = vpop.permute.xlu1 %1458  ;;  %v1455_v48 = vpop.permute.xlu0 %1454 }
 0x5a8   :  { %v1538_v12 = vmul.f32 %v1459_v13, %v2630_v20  ;;  %v1537_v37 = vmul.f32 %v1455_v48, %v2628_v17 }
 0x5aa   :  { %v1554_v10 = vsel %vm433_vm3, %v1538_v12, 0.0  ;;  %v1553_v43 = vsel %vm433_vm3, %v1537_v37, 0.0 }
 0x5ab   :  { %v1466_v38 = vpop.permute.xlu1 %1465  ;;  %v1470_v39 = vpop.permute.xlu0 %1469  ;;  %v1555_v55 = vadd.f32 %v1554_v10, %v1553_v43 }
 0x5ac   :  { %v1539_v44 = vmul.f32 %v1466_v38, %v2633_v24  ;;  %v1540_v54 = vmul.f32 %v1470_v39, %v2635_v26 }
 0x5ad   :  { %v1556_v63 = vrot.slane %v1555_v55, 4 }
 0x5ae   :  { %v1562_v47 = vsel %vm433_vm3, %v1539_v44, 0.0  ;;  %v1563_v49 = vsel %vm433_vm3, %v1540_v54, 0.0 }
 0x5af   :  { %v1564_v52 = vadd.f32 %v1563_v49, %v1562_v47  ;;  %v1477_v62 = vpop.permute.xlu1 %1476  ;;  %v1481_v20 = vpop.permute.xlu0 %1480  ;;  %v1557_v30 = vadd.f32 %v1556_v63, %v1555_v55 }
 0x5b0   :  { %v1541_v17 = vmul.f32 %v1477_v62, %v2641_v28  ;;  %v1542_v53 = vmul.f32 %v1481_v20, %v2643_v33 }
 0x5b1   :  { %v1565_v24 = vrot.slane %v1564_v52, 4  ;;  %v1558_v22 = vrot.slane %v1557_v30, 2 }
 0x5b2   :  { %v1571_v18 = vsel %vm433_vm3, %v1541_v17, 0.0  ;;  %v1572_v11 = vsel %vm433_vm3, %v1542_v53, 0.0 }
 0x5b3   :  { %v1573_v56 = vadd.f32 %v1572_v11, %v1571_v18  ;;  %v1488_v26 = vpop.permute.xlu1 %1487  ;;  %v1492_v58 = vpop.permute.xlu0 %1491  ;;  %v1566_v33 = vadd.f32 %v1565_v24, %v1564_v52  ;;  %v1559_v34 = vadd.f32 %v1558_v22, %v1557_v30 }
 0x5b4   :  { %v1543_v35 = vmul.f32 %v1488_v26, %v2662_v9  ;;  %v1544_v60 = vmul.f32 %v1492_v58, %v2664_v29 }
 0x5b5   :  { %v1574_v8 = vrot.slane %v1573_v56, 4  ;;  %v1567_v50 = vrot.slane %v1566_v33, 2  ;;  %v1560_v54 = vrot.slane %v1559_v34, 1 }
 0x5b6   :  { %v1580_v61 = vsel %vm433_vm3, %v1543_v35, 0.0  ;;  %v1581_v28 = vsel %vm433_vm3, %v1544_v60, 0.0 }
 0x5b7   :  { %v1582_v23 = vadd.f32 %v1581_v28, %v1580_v61  ;;  %v1499_v0 = vpop.permute.xlu1 %1498  ;;  %v1503_v36 = vpop.permute.xlu0 %1502  ;;  %v1575_v1 = vadd.f32 %v1574_v8, %v1573_v56  ;;  %v1568_v14 = vadd.f32 %v1567_v50, %v1566_v33  ;;  %v1561_v8 = vadd.f32 %v1560_v54, %v1559_v34  ;;  %v1908_v54 = vld [vmem:[%s2834_s3 + $0x3] ss:$0 sm:$0xff] }
 0x5b8   :  { %v1545_v57 = vmul.f32 %v1499_v0, %v2652_v41  ;;  %v1546_v6 = vmul.f32 %v1503_v36, %v2654_v42 }
 0x5b9   :  { %v1583_v21 = vrot.slane %v1582_v23, 4  ;;  %v1576_v16 = vrot.slane %v1575_v1, 2  ;;  %v1569_v47 = vrot.slane %v1568_v14, 1 }
 0x5ba   :  { %v1589_v9 = vsel %vm433_vm3, %v1545_v57, 0.0  ;;  %v1590_v29 = vsel %vm433_vm3, %v1546_v6, 0.0  ;;  %v1625_v6 = vpack.c.bf16 %v1561_v8, %v1561_v8 }
 0x5bb   :  { %v1584_v2 = vadd.f32 %v1583_v21, %v1582_v23  ;;  %v1510_v59 = vpop.permute.xlu1 %1509  ;;  %v1514_v46 = vpop.permute.xlu0 %1513  ;;  %v1591_v3 = vadd.f32 %v1590_v29, %v1589_v9  ;;  %v1577_v12 = vadd.f32 %v1576_v16, %v1575_v1  ;;  %v1570_v26 = vadd.f32 %v1569_v47, %v1568_v14 }
 0x5bc   :  { %v1547_v5 = vmul.f32 %v1510_v59, %v2673_v19  ;;  %v1548_v27 = vmul.f32 %v1514_v46, %v2675_v4 }
 0x5bd   :  { %v1585_v51 = vrot.slane %v1584_v2, 2  ;;  %v1592_v41 = vrot.slane %v1591_v3, 4  ;;  %v1578_v20 = vrot.slane %v1577_v12, 1 }
 0x5be   :  { %v1598_v42 = vsel %vm433_vm3, %v1547_v5, 0.0  ;;  %v1599_v25 = vsel %vm433_vm3, %v1548_v27, 0.0 }
 0x5bf   :  { %v1600_v31 = vadd.f32 %v1599_v25, %v1598_v42  ;;  %v1521_v13 = vpop.permute.xlu1 %1520  ;;  %v1525_v48 = vpop.permute.xlu0 %1524  ;;  %v1593_v37 = vadd.f32 %v1592_v41, %v1591_v3  ;;  %v1586_v19 = vadd.f32 %v1585_v51, %v1584_v2  ;;  %v1579_v61 = vadd.f32 %v1578_v20, %v1577_v12 }
 0x5c0   :  { %v1549_v38 = vmul.f32 %v1521_v13, %v2685_v40  ;;  %v1550_v39 = vmul.f32 %v1525_v48, %v2687_v7  ;;  %v1650_v3 = vunpack.c.l.b16 %v1625_v6 }
 0x5c1   :  { %v1601_v10 = vrot.slane %v1600_v31, 4  ;;  %v1594_v4 = vrot.slane %v1593_v37, 2  ;;  %v1587_v7 = vrot.slane %v1586_v19, 1  ;;  %v1627_v57 = vpack.c.bf16 %v1579_v61, %v1579_v61 }
 0x5c2   :  { %v1607_v43 = vsel %vm433_vm3, %v1549_v38, 0.0  ;;  %v1608_v44 = vsel %vm433_vm3, %v1550_v39, 0.0 }
 0x5c3   :  { %v1602_v49 = vadd.f32 %v1601_v10, %v1600_v31  ;;  %v1609_v55 = vadd.f32 %v1608_v44, %v1607_v43  ;;  %v1532_v52 = vpop.permute.xlu1 %1531  ;;  %v1536_v62 = vpop.permute.xlu0 %1535  ;;  %v1595_v17 = vadd.f32 %v1594_v4, %v1593_v37  ;;  %v1588_v28 = vadd.f32 %v1587_v7, %v1586_v19  ;;  %v2056_v4 = vld [vmem:[%s2833_s2 + $0x48] sm:$0xff]   ;;  %v2057_v44 = vld [vmem:[%s2833_s2 + $0x50] sm:$0xff]   ;;  %v1912_v7 = vld [vmem:[%s2834_s3 + $0x4] ss:$0 sm:$0xff] }
 0x5c4   :  { %v1551_v53 = vmul.f32 %v1532_v52, %v2695_v15  ;;  %v1552_v40 = vmul.f32 %v1536_v62, %v2698_v45  ;;  %v1626_v45 = vpack.c.bf16 %v1570_v26, %v1570_v26  ;;  %v1652_v16 = vunpack.c.l.b16 %v1627_v57 }
 0x5c5   :  { %v1603_v18 = vrot.slane %v1602_v49, 2  ;;  %v1610_v11 = vrot.slane %v1609_v55, 4  ;;  %v1596_v63 = vrot.slane %v1595_v17, 1  ;;  %v1628_v21 = vpack.c.bf16 %v1588_v28, %v1588_v28 }
 0x5c6   :  { %v1616_v24 = vsel %vm433_vm3, %v1551_v53, 0.0  ;;  %v1617_v56 = vsel %vm433_vm3, %v1552_v40, 0.0  ;;  %v1651_v50 = vunpack.c.l.b16 %v1626_v45  ;;  %v2059_v40 = vld [vmem:[%s2833_s2 + $0x60] sm:$0xff]  }
 0x5c7   :  { %v1604_v58 = vadd.f32 %v1603_v18, %v1602_v49  ;;  %v1611_v35 = vadd.f32 %v1610_v11, %v1609_v55  ;;  %v1618_v60 = vadd.f32 %v1617_v56, %v1616_v24  ;;  %v1597_v23 = vadd.f32 %v1596_v63, %v1595_v17  ;;  %v2058_v17 = vld [vmem:[%s2833_s2 + $0x58] sm:$0xff]   ;;  %s2099_s2 = smov [#allocation2]  }
 0x5c8   :  { %v1653_v5 = vunpack.c.l.b16 %v1628_v21  ;;  %v1658_v42 = vsel %vm666_vm4, %v1651_v50, %v1650_v3  ;;  %s1873_s27 = sshll.u32 %s2099_s2, 4  ;;  %s1874_s27 = int_to_ptr.vmem [resolvable:$true] %s1873_s27 }
 0x5c9   :  { %v1605_v30 = vrot.slane %v1604_v58, 1  ;;  %v1612_v33 = vrot.slane %v1611_v35, 2  ;;  %v1619_v15 = vrot.slane %v1618_v60, 4  ;;  %v1629_v22 = vpack.c.bf16 %v1597_v23, %v1597_v23  ;;  %p2073_p1 = scmp.lt.s32.totalorder %s1874_s27, %s1874_s27 }
 0x5ca   :  { %v1659_v14 = vsel %vm668_vm5, %v1652_v16, %v1658_v42 }
 0x5cb   :  { %v1606_v0 = vadd.f32 %v1605_v30, %v1604_v58  ;;  %v1613_v36 = vadd.f32 %v1612_v33, %v1611_v35  ;;  %v1620_v1 = vadd.f32 %v1619_v15, %v1618_v60  ;;  %v1654_v41 = vunpack.c.l.b16 %v1629_v22 }
 0x5cc   :  { %v1660_v13 = vsel %vm670_vm6, %v1653_v5, %v1659_v14 }
 0x5cd   :  { %v1614_v9 = vrot.slane %v1613_v36, 1  ;;  %v1621_v29 = vrot.slane %v1620_v1, 2  ;;  %v1630_v2 = vpack.c.bf16 %v1606_v0, %v1606_v0  ;;  %v1661_v12 = vsel %vm672_vm7, %v1654_v41, %v1660_v13 }
 0x5cf   :  { %v1615_v59 = vadd.f32 %v1614_v9, %v1613_v36  ;;  %v1622_v46 = vadd.f32 %v1621_v29, %v1620_v1  ;;  %v1655_v25 = vunpack.c.l.b16 %v1630_v2 }
 0x5d1   :  { %v1631_v27 = vpack.c.bf16 %v1615_v59, %v1615_v59  ;;  %v1623_v51 = vrot.slane %v1622_v46, 1  ;;  %v1662_v38 = vsel %vm674_vm8, %v1655_v25, %v1661_v12 }
 0x5d3   :  { %v1624_v34 = vadd.f32 %v1623_v51, %v1622_v46  ;;  %v1656_v31 = vunpack.c.l.b16 %v1631_v27 }
 0x5d5   :  { %v1632_v48 = vpack.c.bf16 %v1624_v34, %v1624_v34  ;;  %v1663_v39 = vsel %vm676_vm10, %v1656_v31, %v1662_v38 }
 0x5d7   :  { %v1657_v37 = vunpack.c.l.b16 %v1632_v48 }
 0x5d9   :  { %v1664_v19 = vsel %vm678_vm11, %v1657_v37, %v1663_v39 }
 0x5da   :  { %v1665_v10 = vpack.c.b16 %v1664_v19, %v1664_v19 }
 0x5dc   :  { %1666 = vrot.lane.b32.xlu1 %v1665_v10, %s2095_s28 }
 0x64e   :  { %v1667_v43 = vpop.permute.xlu1 %1666 }
 0x64f   :  { %2016 = vmatmul.mubr.msk.bf16.vlgmr.msra.gmra.mrb[16].mxu0 %vm699_vm12, %v1667_v43 }
 0x650   :  { %2020 = vmatpush3.bf16.msra.mxu0 %v2056_v4  ;;  %2023 = vmatprep.mubr.msk.bf16.mxu0 %vm2097_vm9, %v2096_v32 }
 0x651   :  { %2021 = vmatprep.subr.bf16.mxu0 %v2096_v32 }
 0x654   :  { %2022 = vmatpush3.bf16.msra.mxu0 %v2057_v44 }
 0x655   :  { %2027 = vmatprep.subr.bf16.mxu0 %v2096_v32 }
 0x722   :  { %v1717_v47 = vpop.f32.mrb[16].mxu0 }
 0x723   :  { %v1718_v49 = vadd.f32 %v1908_v54, %v1717_v47  ;;  %v2017_v55 = vpop.f32.mrb[17].mxu0 }
 0x724   :  { %v1720_v52 = vpop.f32.mrb[18].mxu0 }
 0x725   :  { %v1723_v62 = vmax.f32 %v1718_v49, 0.0  ;;  %v2018_v20 = vpop.f32.mrb[19].mxu0 }
 0x727   :  { %v1724_v53 = vpack.c.bf16 %v1723_v62, %v1723_v62 }
 0x729   :  { %2024 = vmatmul.mubr.msk.bf16.vlgmr.msra.gmra.mrb[20].mxu0 %vm699_vm12, %v1724_v53 }
 0x72a   :  { %2028 = vmatpush3.bf16.msra.mxu0 %v2058_v17  ;;  %2031 = vmatprep.mubr.msk.bf16.mxu0 %vm2097_vm9, %v2096_v32 }
 0x72b   :  { %2029 = vmatprep.subr.bf16.mxu0 %v2096_v32  ;;  %v1916_v32 = vld [vmem:[%s2834_s3 + $0x5] ss:$0 sm:$0xff]  ;;  %s2068_s3 = scalar_lea.vmem %s1874_s27, 128 }
 0x72c   :  { %p2069_p0 = scmp.ne.s32.totalorder %s1874_s27, %s2068_s3  ;;  %p2074_p2 = scmp.lt.s32.totalorder %s2068_s3, %s2068_s3 }
 0x72e   :  { %2030 = vmatpush3.bf16.msra.mxu0 %v2059_v40  ;;  %p2075_p3 = por %p2074_p2, %p2073_p1 }
 0x730   :  { %p2076_p4 = pnand %p2075_p3, %p2069_p0 }
 0x7fc   :  { %v1783_v18 = vpop.f32.mrb[20].mxu0 }
 0x7fd   :  { %v1784_v11 = vadd.f32 %v1912_v7, %v1783_v18  ;;  %v2025_v63 = vpop.f32.mrb[21].mxu0 }
 0x7fe   :  { %v1786_v24 = vpop.f32.mrb[22].mxu0 }
 0x7ff   :  { %v1789_v56 = vmax.f32 %v1784_v11, 0.0  ;;  %v2026_v26 = vpop.f32.mrb[23].mxu0 }
 0x801   :  { %v1790_v58 = vpack.c.bf16 %v1789_v56, %v1789_v56 }
 0x803   :  { %2032 = vmatmul.mubr.msk.bf16.vlgmr.msra.gmra.mrb[24].mxu0 %vm699_vm12, %v1790_v58 }
 0x8d6   :  { %v1849_v35 = vpop.f32.mrb[24].mxu0 }
 0x8d7   :  { %v1850_v60 = vadd.f32 %v1916_v32, %v1849_v35  ;;  %v2033_v8 = vpop.f32.mrb[25].mxu0 }
 0x8d8   :  { %v1852_v61 = vpop.f32.mrb[26].mxu0 }
 0x8d9   :  { %1855 = vmax.xlane.f32.xlu0 %v1850_v60  ;;  %v2034_v28 = vpop.f32.mrb[27].mxu0 }
 0x966   :  { %v1856_v30 = vpop.xlane.xlu0 %1855 }
 0x967   :  { %v1857_v33 = vsub.f32 %v1850_v60, %v1856_v30 }
 0x969   :  { %v1858_v15 = vmul.f32 1.442695, %v1857_v33 }
 0x96b   :  { %2064 = vpow2.f32 %v1858_v15 }
 0x975   :  { %v2065_v23 = vpop.eup %2064 }
 0x976   :  { %1860 = vadd.xlane.f32.xlu1 %v2065_v23 }
 0xa03   :  { %v1861_v45 = vpop.xlane.xlu1 %1860 }
 0xa04   :  { %2066 = vlog2.f32 %v1861_v45 }
 0xa0e   :  { %v2067_v0 = vpop.eup %2066 }
 0xa0f   :  { %v1863_v36 = vmul.f32 0.6931472, %v2067_v0 }
 0xa11   :  { %v1864_v1 = vadd.f32 %v1863_v36, %v1856_v30 }
 0xa13   :  { %v1865_v57 = vsub.f32 %v1850_v60, %v1864_v1 }
 0xa15   :  { %1866 = vst [vmem:[#allocation2] sm:$0xff] %v1865_v57 }
 0xa16   :  { %2079 = shalt.err (!%p2076_p4)
}
 0xa17   :  { %s2080_s30 = scalar_lea.hbm %s2835_s4, 128 }
 0xa18   :  { %p2081_p5 = scmp.ne.s32.totalorder %s2835_s4, %s2080_s30  ;;  %p2084_p6 = scmp.lt.u32.totalorder %s2080_s30, %s2835_s4 }
 0xa1a   :  { %p2086_p7 = pnand %p2084_p6, %p2081_p5 }
 0xa1c   :  { %2089 = shalt.err (!%p2086_p7)
}
 0xa1d   :  { %1876 = dma.vmem_to_hbm [thread:$0]  %s1874_s27, 128, %s2835_s4, [#allocation3]  }
 0xa1e   :  { %2090 = dma.done.wait [#allocation3], 128  }
 0xa1f   :  { %2091 = vsyncadd [#allocation3], 4294967168 }
 0xa20   :  { %1880 = vsyncpa [#allocation3], 1 }

</bundles_post_ra>
